<compile_context>
chip_gen: v7x
topology: tpu7x:2x2x1
jax: 0.10.0
libtpu: 0.0.40
codegen_flags: <defaults>
</compile_context>

<pallas_src>
import functools
import math
import re

import jax
import jax.numpy as jnp
from jax import lax
from jax.experimental import pallas as pl
from jax.experimental.pallas import tpu as pltpu


def _tpu_generation():
    """Best-effort TPU generation number from device_kind (0 if unknown)."""
    try:
        kind = jax.devices()[0].device_kind
    except Exception:
        return 0
    m = re.search(r"(\d+)", kind)
    return int(m.group(1)) if m else 0


def _pick_tile(length, pref):
    """Largest tile from a 128-aligned ladder that is <= pref and divides `length`."""
    for t in (pref, 1024, 512, 256, 128, 64, 32, 16, 8):
        if t <= pref and t <= length and length % t == 0:
            return t
    return length  # fall back to the full (untiled) extent


def _default_attn_tiles(gen):
    # v6e/v7x: 2x256^2 MXU -> bigger tiles fill the MXU and amortize ~600-cycle grid-step
    # overhead. v5e: 4x128^2 MXU, 1 vst slot, no bf16 VPU -> keep 128x128 (larger spills).
    if gen >= 6:
        return 256, 512
    return 128, 128


# ---------------------------------------------------------------------------
# Linear projection kernel:  y = x @ W + b   (x flattened to rows)
# (kept as a standalone utility; the AttentionHead path uses the fused kernel below)
# ---------------------------------------------------------------------------
def _linear_kernel(x_ref, w_ref, b_ref, o_ref, *, compute_dtype):
    x = x_ref[...].astype(compute_dtype)
    w = w_ref[...].astype(compute_dtype)
    y = jnp.dot(x, w, preferred_element_type=jnp.float32)
    o_ref[...] = (y + b_ref[...].astype(jnp.float32)).astype(o_ref.dtype)


def linear(x, w, b, *, row_tile=1024, mxu_dtype=jnp.bfloat16):
    """x: (B, L, d_in), w: (d_in, d_out), b: (d_out,)  ->  (B, L, d_out)."""
    B, L, d_in = x.shape
    d_out = w.shape[1]
    R = B * L
    gen = _tpu_generation()
    TR = _pick_tile(R, row_tile)
    if gen >= 7:
        # v7x has 2 TensorCores: keep >= 2 row blocks on the parallel axis.
        while R // TR < 2 and TR > 8:
            TR = _pick_tile(R, TR // 2)

    compute_dtype = mxu_dtype if mxu_dtype is not None else x.dtype
    x2 = x.reshape(R, d_in)          # lane-dense 2D slab; grid overhead amortized over B*L
    b2 = b.reshape(1, d_out)

    itemsize = x.dtype.itemsize
    cost = pl.CostEstimate(
        flops=2 * R * d_in * d_out,
        transcendentals=0,
        bytes_accessed=(R * d_in + d_in * d_out + d_out + R * d_out) * itemsize,
    )

    y2 = pl.pallas_call(
        functools.partial(_linear_kernel, compute_dtype=compute_dtype),
        out_shape=jax.ShapeDtypeStruct((R, d_out), x.dtype),
        grid_spec=pltpu.PrefetchScalarGridSpec(
            num_scalar_prefetch=0,
            grid=(R // TR,),
            in_specs=[
                pl.BlockSpec((TR, d_in), lambda r: (r, 0)),
                pl.BlockSpec((d_in, d_out), lambda r: (0, 0)),   # weight stays resident
                pl.BlockSpec((1, d_out), lambda r: (0, 0)),
            ],
            out_specs=pl.BlockSpec((TR, d_out), lambda r: (r, 0)),
        ),
        compiler_params=pltpu.CompilerParams(
            dimension_semantics=("parallel",),
            vmem_limit_bytes=32 * 1024 * 1024,
        ),
        cost_estimate=cost,
    )(x2, w, b2)
    return y2.reshape(B, L, d_out)


# ---------------------------------------------------------------------------
# Fused AttentionHead kernel: q/k/v projections + flash-style online-softmax attention
# ---------------------------------------------------------------------------
def _fused_head_kernel(q_ref, k_ref, v_ref, wq_ref, bq_ref, wk_ref, bk_ref,
                       wv_ref, bv_ref, o_ref, qp_sc, m_sc, l_sc, acc_sc,
                       *, compute_dtype):
    kv = pl.program_id(2)

    @pl.when(kv == 0)
    def _():
        # q projection once per (batch, q-tile). The 1/sqrt(d_k) scale is already folded
        # into wq/bq host-side, so no per-KV-step rescaling of the q tile.
        xq = q_ref[0].astype(compute_dtype)
        qp = jnp.dot(xq, wq_ref[...].astype(compute_dtype),
                     preferred_element_type=jnp.float32)
        qp_sc[...] = (qp + bq_ref[...].astype(jnp.float32)).astype(qp_sc.dtype)
        m_sc[...] = jnp.full(m_sc.shape, -jnp.inf, dtype=m_sc.dtype)
        l_sc[...] = jnp.zeros(l_sc.shape, dtype=l_sc.dtype)
        acc_sc[...] = jnp.zeros(acc_sc.shape, dtype=acc_sc.dtype)

    # k / v projections for this KV tile (weights + biases stay resident in VMEM).
    kp = (jnp.dot(k_ref[0].astype(compute_dtype), wk_ref[...].astype(compute_dtype),
                  preferred_element_type=jnp.float32)
          + bk_ref[...].astype(jnp.float32)).astype(compute_dtype)
    vp = (jnp.dot(v_ref[0].astype(compute_dtype), wv_ref[...].astype(compute_dtype),
                  preferred_element_type=jnp.float32)
          + bv_ref[...].astype(jnp.float32)).astype(compute_dtype)

    # 'qd,kd->qk': contract last dim of both operands -- no K transpose / XLU relayout.
    s = lax.dot_general(qp_sc[...], kp,
                        dimension_numbers=(((1,), (1,)), ((), ())),
                        preferred_element_type=jnp.float32)

    m_prev = m_sc[...]
    m_new = jnp.maximum(m_prev, jnp.max(s, axis=-1, keepdims=True))
    alpha = jnp.exp(m_prev - m_new)
    p = jnp.exp(s - m_new)
    l_sc[...] = alpha * l_sc[...] + jnp.sum(p, axis=-1, keepdims=True)
    acc_sc[...] = alpha * acc_sc[...] + jnp.dot(
        p.astype(compute_dtype), vp, preferred_element_type=jnp.float32)
    m_sc[...] = m_new

    # TODO(synk): nn.Dropout(0.1) on the attention weights omitted (eval-mode identity);
    # training mode would use pltpu.prng_seed + pltpu.prng_random_bits on the p tile.

    @pl.when(kv == pl.num_programs(2) - 1)
    def _():
        inv_l = pl.reciprocal(l_sc[...], approx=True)   # EUP slot, essentially free
        o_ref[0] = (acc_sc[...] * inv_l).astype(o_ref.dtype)


def attention_head(queries, keys, values, params, mask=None, *,
                   mxu_dtype=jnp.bfloat16, tq=None, tk=None):
    """Fused AttentionHead forward. queries: (B, Lq, d_model), keys/values: (B, Lk, d_model).

    Faithful to the torch module: AttentionHead.forward never forwards `mask`, so the
    fused kernel has no mask input at all.
    """
    del mask
    B, Lq, d_model = queries.shape
    _, Lk, _ = keys.shape
    d_feature = params["wq"].shape[1]

    gen = _tpu_generation()
    tq_d, tk_d = _default_attn_tiles(gen)
    TQ = _pick_tile(Lq, tq if tq is not None else tq_d)
    TK = _pick_tile(Lk, tk if tk is not None else tk_d)
    if gen >= 7:
        # v7x: keep >= 2 blocks on the parallel axes so both TensorCores get work.
        while B * (Lq // TQ) < 2 and TQ > 8:
            TQ = _pick_tile(Lq, TQ // 2)

    compute_dtype = mxu_dtype if mxu_dtype is not None else queries.dtype

    # Fold 1/sqrt(d_k) into Wq / bq host-side (free): scale*(x@Wq+bq) == (x@(scale*Wq)+scale*bq).
    scale = 1.0 / math.sqrt(d_feature)
    wq = params["wq"] * jnp.asarray(scale, params["wq"].dtype)
    bq = params["bq"] * jnp.asarray(scale, params["bq"].dtype)
    wk, bk = params["wk"], params["bk"]
    wv, bv = params["wv"], params["bv"]
    bq2 = bq.reshape(1, d_feature)
    bk2 = bk.reshape(1, d_feature)
    bv2 = bv.reshape(1, d_feature)

    grid = (B, Lq // TQ, Lk // TK)
    itemsize = queries.dtype.itemsize
    n_q_tiles = Lq // TQ
    cost = pl.CostEstimate(
        flops=(2 * B * Lq * d_model * d_feature
               + 2 * 2 * B * Lk * d_model * d_feature * n_q_tiles
               + 2 * 2 * B * Lq * Lk * d_feature),
        transcendentals=B * Lq * Lk,
        bytes_accessed=(B * Lq * d_model + 2 * B * Lk * d_model
                        + 3 * d_model * d_feature + 3 * d_feature
                        + B * Lq * d_feature) * itemsize,
    )

    kernel = functools.partial(_fused_head_kernel, compute_dtype=compute_dtype)

    return pl.pallas_call(
        kernel,
        out_shape=jax.ShapeDtypeStruct((B, Lq, d_feature), queries.dtype),
        grid_spec=pltpu.PrefetchScalarGridSpec(
            num_scalar_prefetch=0,
            grid=grid,
            in_specs=[
                pl.BlockSpec((1, TQ, d_model), lambda b, qi, ki: (b, qi, 0)),
                pl.BlockSpec((1, TK, d_model), lambda b, qi, ki: (b, ki, 0)),
                pl.BlockSpec((1, TK, d_model), lambda b, qi, ki: (b, ki, 0)),
                pl.BlockSpec((d_model, d_feature), lambda b, qi, ki: (0, 0)),
                pl.BlockSpec((1, d_feature), lambda b, qi, ki: (0, 0)),
                pl.BlockSpec((d_model, d_feature), lambda b, qi, ki: (0, 0)),
                pl.BlockSpec((1, d_feature), lambda b, qi, ki: (0, 0)),
                pl.BlockSpec((d_model, d_feature), lambda b, qi, ki: (0, 0)),
                pl.BlockSpec((1, d_feature), lambda b, qi, ki: (0, 0)),
            ],
            out_specs=pl.BlockSpec((1, TQ, d_feature), lambda b, qi, ki: (b, qi, 0)),
            scratch_shapes=[
                pltpu.VMEM((TQ, d_feature), compute_dtype),   # projected (scaled) q tile
                pltpu.VMEM((TQ, 1), jnp.float32),             # running max m
                pltpu.VMEM((TQ, 1), jnp.float32),             # running denom l
                pltpu.VMEM((TQ, d_feature), jnp.float32),     # running accumulator
            ],
        ),
        compiler_params=pltpu.CompilerParams(
            dimension_semantics=("parallel", "parallel", "arbitrary"),
            vmem_limit_bytes=32 * 1024 * 1024,
        ),
        cost_estimate=cost,
    )(queries, keys, values, wq, bq2, wk, bk2, wv, bv2)


# ---------------------------------------------------------------------------
# Standalone ScaledDotProductAttention (flash-style, optional masked_fill(mask, 0))
# ---------------------------------------------------------------------------
def _sdpa_flash_kernel(*refs, has_mask, compute_dtype):
    if has_mask:
        q_ref, k_ref, v_ref, mask_ref, o_ref, q_sc, m_sc, l_sc, acc_sc = refs
    else:
        q_ref, k_ref, v_ref, o_ref, q_sc, m_sc, l_sc, acc_sc = refs
        mask_ref = None

    kv = pl.program_id(2)
    d_k = k_ref.shape[-1]

    @pl.when(kv == 0)
    def _():
        # Scale applied ONCE per q-tile into the scratch copy (not per KV step).
        q_sc[...] = (q_ref[0].astype(jnp.float32)
                     * (1.0 / math.sqrt(d_k))).astype(q_sc.dtype)
        m_sc[...] = jnp.full(m_sc.shape, -jnp.inf, dtype=m_sc.dtype)
        l_sc[...] = jnp.zeros(l_sc.shape, dtype=l_sc.dtype)
        acc_sc[...] = jnp.zeros(acc_sc.shape, dtype=acc_sc.dtype)

    k = k_ref[0].astype(compute_dtype)
    v = v_ref[0].astype(compute_dtype)

    s = lax.dot_general(q_sc[...], k,
                        dimension_numbers=(((1,), (1,)), ((), ())),
                        preferred_element_type=jnp.float32)

    if has_mask:
        # torch masked_fill(mask, 0) BEFORE softmax (exact reference semantics).
        s = jnp.where(mask_ref[0] != 0, jnp.float32(0.0), s)

    m_prev = m_sc[...]
    m_new = jnp.maximum(m_prev, jnp.max(s, axis=-1, keepdims=True))
    alpha = jnp.exp(m_prev - m_new)
    p = jnp.exp(s - m_new)
    l_sc[...] = alpha * l_sc[...] + jnp.sum(p, axis=-1, keepdims=True)
    acc_sc[...] = alpha * acc_sc[...] + jnp.dot(
        p.astype(compute_dtype), v, preferred_element_type=jnp.float32)
    m_sc[...] = m_new

    @pl.when(kv == pl.num_programs(2) - 1)
    def _():
        inv_l = pl.reciprocal(l_sc[...], approx=True)
        o_ref[0] = (acc_sc[...] * inv_l).astype(o_ref.dtype)


def scaled_dot_product_attention(q, k, v, mask=None, *,
                                 mxu_dtype=jnp.bfloat16, tq=None, tk=None):
    """q: (B, Lq, D), k: (B, Lk, D), v: (B, Lk, Dv), mask: (B, Lq, Lk) bool/int or None."""
    B, Lq, D = q.shape
    _, Lk, Dv = v.shape
    assert k.shape == (B, Lk, D)
    has_mask = mask is not None

    gen = _tpu_generation()
    tq_d, tk_d = _default_attn_tiles(gen)
    TQ = _pick_tile(Lq, tq if tq is not None else tq_d)
    TK = _pick_tile(Lk, tk if tk is not None else tk_d)
    if gen >= 7:
        while B * (Lq // TQ) < 2 and TQ > 8:
            TQ = _pick_tile(Lq, TQ // 2)

    compute_dtype = mxu_dtype if mxu_dtype is not None else q.dtype
    grid = (B, Lq // TQ, Lk // TK)

    in_specs = [
        pl.BlockSpec((1, TQ, D), lambda b, qi, ki: (b, qi, 0)),
        pl.BlockSpec((1, TK, D), lambda b, qi, ki: (b, ki, 0)),
        pl.BlockSpec((1, TK, Dv), lambda b, qi, ki: (b, ki, 0)),
    ]
    args = [q, k, v]
    if has_mask:
        in_specs.append(pl.BlockSpec((1, TQ, TK), lambda b, qi, ki: (b, qi, ki)))
        args.append(mask.astype(jnp.int8))   # 1 byte/elem, tiled along KV

    itemsize = q.dtype.itemsize
    cost = pl.CostEstimate(
        flops=2 * B * Lq * Lk * (D + Dv),
        transcendentals=B * Lq * Lk,
        bytes_accessed=(B * Lq * D + B * Lk * D + B * Lk * Dv + B * Lq * Dv) * itemsize
        + (B * Lq * Lk if has_mask else 0),
    )

    kernel = functools.partial(_sdpa_flash_kernel, has_mask=has_mask,
                               compute_dtype=compute_dtype)

    return pl.pallas_call(
        kernel,
        out_shape=jax.ShapeDtypeStruct((B, Lq, Dv), q.dtype),
        grid_spec=pltpu.PrefetchScalarGridSpec(
            num_scalar_prefetch=0,
            grid=grid,
            in_specs=in_specs,
            out_specs=pl.BlockSpec((1, TQ, Dv), lambda b, qi, ki: (b, qi, 0)),
            scratch_shapes=[
                pltpu.VMEM((TQ, D), compute_dtype),   # scaled q tile
                pltpu.VMEM((TQ, 1), jnp.float32),     # running max m
                pltpu.VMEM((TQ, 1), jnp.float32),     # running denom l
                pltpu.VMEM((TQ, Dv), jnp.float32),    # running accumulator
            ],
        ),
        compiler_params=pltpu.CompilerParams(
            dimension_semantics=("parallel", "parallel", "arbitrary"),
            vmem_limit_bytes=32 * 1024 * 1024,
        ),
        cost_estimate=cost,
    )(*args)


# ---------------------------------------------------------------------------
# Pure-JAX references (true f32 via HIGHEST precision)
# ---------------------------------------------------------------------------
def _sdpa_ref(q, k, v, mask=None):
    hp = jax.lax.Precision.HIGHEST
    d_k = k.shape[-1]
    attn = jnp.einsum("bqd,bkd->bqk", q, k, precision=hp) / math.sqrt(d_k)
    if mask is not None:
        attn = jnp.where(mask, 0.0, attn)
    attn = jax.nn.softmax(attn, axis=-1)
    return jnp.einsum("bqk,bkd->bqd", attn, v, precision=hp)


def _attention_head_ref(queries, keys, values, params):
    hp = jax.lax.Precision.HIGHEST
    q = jnp.einsum("bld,df->blf", queries, params["wq"], precision=hp) + params["bq"]
    k = jnp.einsum("bld,df->blf", keys, params["wk"], precision=hp) + params["bk"]
    v = jnp.einsum("bld,df->blf", values, params["wv"], precision=hp) + params["bv"]
    return _sdpa_ref(q, k, v, mask=None)


if __name__ == "__main__":
    key = jax.random.PRNGKey(0)
    k_params, k_q, k_k, k_v, k_m = jax.random.split(key, 5)

    B, Lq, Lk = 2, 128, 256
    d_model, d_feature = 64, 128     # lane-dense (128) attention feature dim

    kw1, kw2, kw3, kb1, kb2, kb3 = jax.random.split(k_params, 6)
    w_scale = 1.0 / math.sqrt(d_model)
    params = {
        "wq": jax.random.normal(kw1, (d_model, d_feature), jnp.float32) * w_scale,
        "wk": jax.random.normal(kw2, (d_model, d_feature), jnp.float32) * w_scale,
        "wv": jax.random.normal(kw3, (d_model, d_feature), jnp.float32) * w_scale,
        "bq": jax.random.normal(kb1, (d_feature,), jnp.float32) * 0.02,
        "bk": jax.random.normal(kb2, (d_feature,), jnp.float32) * 0.02,
        "bv": jax.random.normal(kb3, (d_feature,), jnp.float32) * 0.02,
    }

    queries = jax.random.normal(k_q, (B, Lq, d_model), jnp.float32)
    keys = jax.random.normal(k_k, (B, Lk, d_model), jnp.float32)
    values = jax.random.normal(k_v, (B, Lk, d_model), jnp.float32)

    ref = _attention_head_ref(queries, keys, values, params)

    # --- fused AttentionHead forward, default perf path (bf16 MXU operands, f32 accum) ---
    out = attention_head(queries, keys, values, params)
    out = jax.block_until_ready(out)
    assert out.shape == (B, Lq, d_feature)
    assert jnp.allclose(out, ref, atol=1.5e-2, rtol=1.5e-2), "fused head (bf16 MXU) mismatch"

    # --- fused AttentionHead forward, exact input-dtype MXU path (tight tolerance) ---
    out_f32 = attention_head(queries, keys, values, params, mxu_dtype=None)
    out_f32 = jax.block_until_ready(out_f32)
    assert jnp.allclose(out_f32, ref, atol=5e-3, rtol=5e-3), "fused head (f32 MXU) mismatch"

    # --- standalone ScaledDotProductAttention with a mask (masked_fill(mask, 0) semantics) ---
    q_p = linear(queries, params["wq"], params["bq"], mxu_dtype=None)
    k_p = linear(keys, params["wk"], params["bk"], mxu_dtype=None)
    v_p = linear(values, params["wv"], params["bv"], mxu_dtype=None)
    mask = jax.random.bernoulli(k_m, 0.25, (B, Lq, Lk))
    ref_m = _sdpa_ref(q_p, k_p, v_p, mask)
    out_m = scaled_dot_product_attention(q_p, k_p, v_p, mask)              # bf16 MXU path
    out_m = jax.block_until_ready(out_m)
    assert jnp.allclose(out_m, ref_m, atol=1.5e-2, rtol=1.5e-2), "masked SDPA (bf16) mismatch"
    out_m_f32 = scaled_dot_product_attention(q_p, k_p, v_p, mask, mxu_dtype=None)
    out_m_f32 = jax.block_until_ready(out_m_f32)
    assert jnp.allclose(out_m_f32, ref_m, atol=5e-3, rtol=5e-3), "masked SDPA (f32) mismatch"

    # --- bf16 inputs end-to-end (native bf16 MXU path with f32 accumulation) ---
    params_bf16 = jax.tree_util.tree_map(lambda a: a.astype(jnp.bfloat16), params)
    out_bf16 = attention_head(
        queries.astype(jnp.bfloat16),
        keys.astype(jnp.bfloat16),
        values.astype(jnp.bfloat16),
        params_bf16,
    )
    out_bf16 = jax.block_until_ready(out_bf16)
    assert out_bf16.shape == (B, Lq, d_feature)
    assert bool(jnp.all(jnp.isfinite(out_bf16.astype(jnp.float32))))

    print("KERNEL_OK")
</pallas_src>

<mosaic_0001>
module attributes {stable_mosaic.version = 11 : i64} {
  func.func @_fused_head_kernel(%arg0: i32, %arg1: i32, %arg2: i32, %arg3: memref<1x128x64xf32, #tpu.memory_space<vmem>>, %arg4: memref<1x128x64xf32, #tpu.memory_space<vmem>>, %arg5: memref<1x128x64xf32, #tpu.memory_space<vmem>>, %arg6: memref<64x128xf32, #tpu.memory_space<vmem>>, %arg7: memref<1x128xf32, #tpu.memory_space<vmem>>, %arg8: memref<64x128xf32, #tpu.memory_space<vmem>>, %arg9: memref<1x128xf32, #tpu.memory_space<vmem>>, %arg10: memref<64x128xf32, #tpu.memory_space<vmem>>, %arg11: memref<1x128xf32, #tpu.memory_space<vmem>>, %arg12: memref<1x128x128xf32, #tpu.memory_space<vmem>>, %arg13: memref<128x128xbf16, #tpu.memory_space<vmem>>, %arg14: memref<128x1xf32, #tpu.memory_space<vmem>>, %arg15: memref<128x1xf32, #tpu.memory_space<vmem>>, %arg16: memref<128x128xf32, #tpu.memory_space<vmem>>) attributes {dimension_semantics = [#tpu.dimension_semantics<parallel>, #tpu.dimension_semantics<parallel>, #tpu.dimension_semantics<arbitrary>], iteration_bounds = array<i64: 2, 1, 2>, scalar_prefetch = 0 : i64, scratch_operands = 4 : i64, tpu.core_type = #tpu.core_type<tc>, window_params = [{transform_indices = @transform_0, window_bounds = array<i64: 1, 128, 64>}, {transform_indices = @transform_1, window_bounds = array<i64: 1, 128, 64>}, {transform_indices = @transform_2, window_bounds = array<i64: 1, 128, 64>}, {pipeline_mode = #tpu.pipeline_mode<synchronous>, transform_indices = @transform_3, window_bounds = array<i64: 64, 128>}, {pipeline_mode = #tpu.pipeline_mode<synchronous>, transform_indices = @transform_4, window_bounds = array<i64: 1, 128>}, {pipeline_mode = #tpu.pipeline_mode<synchronous>, transform_indices = @transform_5, window_bounds = array<i64: 64, 128>}, {pipeline_mode = #tpu.pipeline_mode<synchronous>, transform_indices = @transform_6, window_bounds = array<i64: 1, 128>}, {pipeline_mode = #tpu.pipeline_mode<synchronous>, transform_indices = @transform_7, window_bounds = array<i64: 64, 128>}, {pipeline_mode = #tpu.pipeline_mode<synchronous>, transform_indices = @transform_8, window_bounds = array<i64: 1, 128>}, {transform_indices = @transform_9, window_bounds = array<i64: 1, 128, 128>}]} {
    %c0_i32 = arith.constant 0 : i32
    %0 = arith.cmpi eq, %arg2, %c0_i32 : i32
    %1 = arith.extui %0 : i1 to i32
    %c0_i32_0 = arith.constant 0 : i32
    %2 = arith.cmpi ne, %1, %c0_i32_0 : i32
    scf.if %2 {
      %c0_34 = arith.constant 0 : index
      %c0_35 = arith.constant 0 : index
      %c0_36 = arith.constant 0 : index
      %51 = vector.load %arg3[%c0_34, %c0_35, %c0_36] : memref<1x128x64xf32, #tpu.memory_space<vmem>>, vector<1x128x64xf32>
      %52 = vector.shape_cast %51 : vector<1x128x64xf32> to vector<128x64xf32>
      %53 = arith.truncf %52 : vector<128x64xf32> to vector<128x64xbf16>
      %c0_37 = arith.constant 0 : index
      %c0_38 = arith.constant 0 : index
      %54 = vector.load %arg6[%c0_37, %c0_38] : memref<64x128xf32, #tpu.memory_space<vmem>>, vector<64x128xf32>
      %55 = arith.truncf %54 : vector<64x128xf32> to vector<64x128xbf16>
      %cst_39 = arith.constant dense<0.000000e+00> : vector<128x128xf32>
      %56 = tpu.matmul %53, %55, %cst_39 {dimension_numbers = #tpu.dot_dimension_numbers<[1], [0], [0], [1], [0, 0, 1, 1], [], []>} : vector<128x64xbf16>, vector<64x128xbf16>, vector<128x128xf32> -> vector<128x128xf32>
      %c0_40 = arith.constant 0 : index
      %c0_41 = arith.constant 0 : index
      %57 = vector.load %arg7[%c0_40, %c0_41] : memref<1x128xf32, #tpu.memory_space<vmem>>, vector<1x128xf32>
      %58 = vector.broadcast %57 : vector<1x128xf32> to vector<128x128xf32>
      %59 = arith.addf %56, %58 : vector<128x128xf32>
      %60 = arith.truncf %59 : vector<128x128xf32> to vector<128x128xbf16>
      %c0_42 = arith.constant 0 : index
      %c0_43 = arith.constant 0 : index
      %61 = vector.load %arg13[%c0_42, %c0_43] : memref<128x128xbf16, #tpu.memory_space<vmem>>, vector<128x128xbf16>
      tpu.vector_store %arg13[%c0_42, %c0_43], %60 {strides = array<i32>} : memref<128x128xbf16, #tpu.memory_space<vmem>>, vector<128x128xbf16>,
      %cst_44 = arith.constant 0xFF800000 : f32
      %62 = vector.broadcast %cst_44 : f32 to vector<128x1xf32>
      %c0_45 = arith.constant 0 : index
      %c0_46 = arith.constant 0 : index
      %63 = vector.load %arg14[%c0_45, %c0_46] : memref<128x1xf32, #tpu.memory_space<vmem>>, vector<128x1xf32>
      tpu.vector_store %arg14[%c0_45, %c0_46], %62 {strides = array<i32>} : memref<128x1xf32, #tpu.memory_space<vmem>>, vector<128x1xf32>,
      %cst_47 = arith.constant 0.000000e+00 : f32
      %64 = vector.broadcast %cst_47 : f32 to vector<128x1xf32>
      %c0_48 = arith.constant 0 : index
      %c0_49 = arith.constant 0 : index
      %65 = vector.load %arg15[%c0_48, %c0_49] : memref<128x1xf32, #tpu.memory_space<vmem>>, vector<128x1xf32>
      tpu.vector_store %arg15[%c0_48, %c0_49], %64 {strides = array<i32>} : memref<128x1xf32, #tpu.memory_space<vmem>>, vector<128x1xf32>,
      %cst_50 = arith.constant 0.000000e+00 : f32
      %66 = vector.broadcast %cst_50 : f32 to vector<128x128xf32>
      %c0_51 = arith.constant 0 : index
      %c0_52 = arith.constant 0 : index
      %67 = vector.load %arg16[%c0_51, %c0_52] : memref<128x128xf32, #tpu.memory_space<vmem>>, vector<128x128xf32>
      tpu.vector_store %arg16[%c0_51, %c0_52], %66 {strides = array<i32>} : memref<128x128xf32, #tpu.memory_space<vmem>>, vector<128x128xf32>,
    } else {
    }
    %c0 = arith.constant 0 : index
    %c0_1 = arith.constant 0 : index
    %c0_2 = arith.constant 0 : index
    %3 = vector.load %arg4[%c0, %c0_1, %c0_2] : memref<1x128x64xf32, #tpu.memory_space<vmem>>, vector<1x128x64xf32>
    %4 = vector.shape_cast %3 : vector<1x128x64xf32> to vector<128x64xf32>
    %5 = arith.truncf %4 : vector<128x64xf32> to vector<128x64xbf16>
    %c0_3 = arith.constant 0 : index
    %c0_4 = arith.constant 0 : index
    %6 = vector.load %arg8[%c0_3, %c0_4] : memref<64x128xf32, #tpu.memory_space<vmem>>, vector<64x128xf32>
    %7 = arith.truncf %6 : vector<64x128xf32> to vector<64x128xbf16>
    %cst = arith.constant dense<0.000000e+00> : vector<128x128xf32>
    %8 = tpu.matmul %5, %7, %cst {dimension_numbers = #tpu.dot_dimension_numbers<[1], [0], [0], [1], [0, 0, 1, 1], [], []>} : vector<128x64xbf16>, vector<64x128xbf16>, vector<128x128xf32> -> vector<128x128xf32>
    %c0_5 = arith.constant 0 : index
    %c0_6 = arith.constant 0 : index
    %9 = vector.load %arg9[%c0_5, %c0_6] : memref<1x128xf32, #tpu.memory_space<vmem>>, vector<1x128xf32>
    %10 = vector.broadcast %9 : vector<1x128xf32> to vector<128x128xf32>
    %11 = arith.addf %8, %10 : vector<128x128xf32>
    %12 = arith.truncf %11 : vector<128x128xf32> to vector<128x128xbf16>
    %c0_7 = arith.constant 0 : index
    %c0_8 = arith.constant 0 : index
    %c0_9 = arith.constant 0 : index
    %13 = vector.load %arg5[%c0_7, %c0_8, %c0_9] : memref<1x128x64xf32, #tpu.memory_space<vmem>>, vector<1x128x64xf32>
    %14 = vector.shape_cast %13 : vector<1x128x64xf32> to vector<128x64xf32>
    %15 = arith.truncf %14 : vector<128x64xf32> to vector<128x64xbf16>
    %c0_10 = arith.constant 0 : index
    %c0_11 = arith.constant 0 : index
    %16 = vector.load %arg10[%c0_10, %c0_11] : memref<64x128xf32, #tpu.memory_space<vmem>>, vector<64x128xf32>
    %17 = arith.truncf %16 : vector<64x128xf32> to vector<64x128xbf16>
    %cst_12 = arith.constant dense<0.000000e+00> : vector<128x128xf32>
    %18 = tpu.matmul %15, %17, %cst_12 {dimension_numbers = #tpu.dot_dimension_numbers<[1], [0], [0], [1], [0, 0, 1, 1], [], []>} : vector<128x64xbf16>, vector<64x128xbf16>, vector<128x128xf32> -> vector<128x128xf32>
    %c0_13 = arith.constant 0 : index
    %c0_14 = arith.constant 0 : index
    %19 = vector.load %arg11[%c0_13, %c0_14] : memref<1x128xf32, #tpu.memory_space<vmem>>, vector<1x128xf32>
    %20 = vector.broadcast %19 : vector<1x128xf32> to vector<128x128xf32>
    %21 = arith.addf %18, %20 : vector<128x128xf32>
    %22 = arith.truncf %21 : vector<128x128xf32> to vector<128x128xbf16>
    %c0_15 = arith.constant 0 : index
    %c0_16 = arith.constant 0 : index
    %23 = vector.load %arg13[%c0_15, %c0_16] : memref<128x128xbf16, #tpu.memory_space<vmem>>, vector<128x128xbf16>
    %cst_17 = arith.constant dense<0.000000e+00> : vector<128x128xf32>
    %24 = tpu.matmul %23, %12, %cst_17 {dimension_numbers = #tpu.dot_dimension_numbers<[1], [1], [0], [0], [0, 0, 1, 0], [], []>} : vector<128x128xbf16>, vector<128x128xbf16>, vector<128x128xf32> -> vector<128x128xf32>
    %c0_18 = arith.constant 0 : index
    %c0_19 = arith.constant 0 : index
    %25 = vector.load %arg14[%c0_18, %c0_19] : memref<128x1xf32, #tpu.memory_space<vmem>>, vector<128x1xf32>
    %cst_20 = arith.constant dense<0xFF800000> : vector<128xf32>
    %26 = vector.multi_reduction <maximumf>, %24, %cst_20 [1] : vector<128x128xf32> to vector<128xf32>
    %27 = vector.shape_cast %26 : vector<128xf32> to vector<128x1xf32>
    %28 = arith.maximumf %25, %27 : vector<128x1xf32>
    %29 = arith.subf %25, %28 : vector<128x1xf32>
    %30 = math.exp %29 : vector<128x1xf32>
    %31 = vector.broadcast %28 : vector<128x1xf32> to vector<128x128xf32>
    %32 = arith.subf %24, %31 : vector<128x128xf32>
    %33 = math.exp %32 : vector<128x128xf32>
    %c0_21 = arith.constant 0 : index
    %c0_22 = arith.constant 0 : index
    %34 = vector.load %arg15[%c0_21, %c0_22] : memref<128x1xf32, #tpu.memory_space<vmem>>, vector<128x1xf32>
    %35 = arith.mulf %30, %34 : vector<128x1xf32>
    %cst_23 = arith.constant dense<0.000000e+00> : vector<128xf32>
    %36 = vector.multi_reduction <add>, %33, %cst_23 [1] : vector<128x128xf32> to vector<128xf32>
    %37 = vector.shape_cast %36 : vector<128xf32> to vector<128x1xf32>
    %38 = arith.addf %35, %37 : vector<128x1xf32>
    %c0_24 = arith.constant 0 : index
    %c0_25 = arith.constant 0 : index
    %39 = vector.load %arg15[%c0_24, %c0_25] : memref<128x1xf32, #tpu.memory_space<vmem>>, vector<128x1xf32>
    tpu.vector_store %arg15[%c0_24, %c0_25], %38 {strides = array<i32>} : memref<128x1xf32, #tpu.memory_space<vmem>>, vector<128x1xf32>,
    %c0_26 = arith.constant 0 : index
    %c0_27 = arith.constant 0 : index
    %40 = vector.load %arg16[%c0_26, %c0_27] : memref<128x128xf32, #tpu.memory_space<vmem>>, vector<128x128xf32>
    %41 = vector.broadcast %30 : vector<128x1xf32> to vector<128x128xf32>
    %42 = arith.mulf %41, %40 : vector<128x128xf32>
    %43 = arith.truncf %33 : vector<128x128xf32> to vector<128x128xbf16>
    %cst_28 = arith.constant dense<0.000000e+00> : vector<128x128xf32>
    %44 = tpu.matmul %43, %22, %cst_28 {dimension_numbers = #tpu.dot_dimension_numbers<[1], [0], [0], [1], [0, 0, 1, 1], [], []>} : vector<128x128xbf16>, vector<128x128xbf16>, vector<128x128xf32> -> vector<128x128xf32>
    %45 = arith.addf %42, %44 : vector<128x128xf32>
    %c0_29 = arith.constant 0 : index
    %c0_30 = arith.constant 0 : index
    %46 = vector.load %arg16[%c0_29, %c0_30] : memref<128x128xf32, #tpu.memory_space<vmem>>, vector<128x128xf32>
    tpu.vector_store %arg16[%c0_29, %c0_30], %45 {strides = array<i32>} : memref<128x128xf32, #tpu.memory_space<vmem>>, vector<128x128xf32>,
    %c0_31 = arith.constant 0 : index
    %c0_32 = arith.constant 0 : index
    %47 = vector.load %arg14[%c0_31, %c0_32] : memref<128x1xf32, #tpu.memory_space<vmem>>, vector<128x1xf32>
    tpu.vector_store %arg14[%c0_31, %c0_32], %28 {strides = array<i32>} : memref<128x1xf32, #tpu.memory_space<vmem>>, vector<128x1xf32>,
    %c1_i32 = arith.constant 1 : i32
    %48 = arith.cmpi eq, %arg2, %c1_i32 : i32
    %49 = arith.extui %48 : i1 to i32
    %c0_i32_33 = arith.constant 0 : i32
    %50 = arith.cmpi ne, %49, %c0_i32_33 : i32
    scf.if %50 {
      %c0_34 = arith.constant 0 : index
      %c0_35 = arith.constant 0 : index
      %51 = vector.load %arg15[%c0_34, %c0_35] : memref<128x1xf32, #tpu.memory_space<vmem>>, vector<128x1xf32>
      %52 = tpu.reciprocal %51 {approx = true} : vector<128x1xf32> -> vector<128x1xf32>
      %c0_36 = arith.constant 0 : index
      %c0_37 = arith.constant 0 : index
      %53 = vector.load %arg16[%c0_36, %c0_37] : memref<128x128xf32, #tpu.memory_space<vmem>>, vector<128x128xf32>
      %54 = vector.broadcast %52 : vector<128x1xf32> to vector<128x128xf32>
      %55 = arith.mulf %53, %54 : vector<128x128xf32>
      %c0_38 = arith.constant 0 : index
      %c0_39 = arith.constant 0 : index
      %c0_40 = arith.constant 0 : index
      %56 = vector.load %arg12[%c0_38, %c0_39, %c0_40] : memref<1x128x128xf32, #tpu.memory_space<vmem>>, vector<1x128x128xf32>
      %57 = vector.shape_cast %56 : vector<1x128x128xf32> to vector<128x128xf32>
      %58 = vector.shape_cast %55 : vector<128x128xf32> to vector<1x128x128xf32>
      tpu.vector_store %arg12[%c0_38, %c0_39, %c0_40], %58 {strides = array<i32>} : memref<1x128x128xf32, #tpu.memory_space<vmem>>, vector<1x128x128xf32>,
    } else {
    }
    return
  }
  func.func @transform_0(%arg0: i32, %arg1: i32, %arg2: i32) -> (i32, i32, i32) {
    %c0_i32 = arith.constant 0 : i32
    %c0_i32_0 = arith.constant 0 : i32
    return %arg0, %arg1, %c0_i32 : i32, i32, i32
  }
  func.func @transform_1(%arg0: i32, %arg1: i32, %arg2: i32) -> (i32, i32, i32) {
    %c0_i32 = arith.constant 0 : i32
    %c0_i32_0 = arith.constant 0 : i32
    return %arg0, %arg2, %c0_i32 : i32, i32, i32
  }
  func.func @transform_2(%arg0: i32, %arg1: i32, %arg2: i32) -> (i32, i32, i32) {
    %c0_i32 = arith.constant 0 : i32
    %c0_i32_0 = arith.constant 0 : i32
    return %arg0, %arg2, %c0_i32 : i32, i32, i32
  }
  func.func @transform_3(%arg0: i32, %arg1: i32, %arg2: i32) -> (i32, i32) {
    %c0_i32 = arith.constant 0 : i32
    %c0_i32_0 = arith.constant 0 : i32
    %c0_i32_1 = arith.constant 0 : i32
    return %c0_i32, %c0_i32_0 : i32, i32
  }
  func.func @transform_4(%arg0: i32, %arg1: i32, %arg2: i32) -> (i32, i32) {
    %c0_i32 = arith.constant 0 : i32
    %c0_i32_0 = arith.constant 0 : i32
    %c0_i32_1 = arith.constant 0 : i32
    return %c0_i32, %c0_i32_0 : i32, i32
  }
  func.func @transform_5(%arg0: i32, %arg1: i32, %arg2: i32) -> (i32, i32) {
    %c0_i32 = arith.constant 0 : i32
    %c0_i32_0 = arith.constant 0 : i32
    %c0_i32_1 = arith.constant 0 : i32
    return %c0_i32, %c0_i32_0 : i32, i32
  }
  func.func @transform_6(%arg0: i32, %arg1: i32, %arg2: i32) -> (i32, i32) {
    %c0_i32 = arith.constant 0 : i32
    %c0_i32_0 = arith.constant 0 : i32
    %c0_i32_1 = arith.constant 0 : i32
    return %c0_i32, %c0_i32_0 : i32, i32
  }
  func.func @transform_7(%arg0: i32, %arg1: i32, %arg2: i32) -> (i32, i32) {
    %c0_i32 = arith.constant 0 : i32
    %c0_i32_0 = arith.constant 0 : i32
    %c0_i32_1 = arith.constant 0 : i32
    return %c0_i32, %c0_i32_0 : i32, i32
  }
  func.func @transform_8(%arg0: i32, %arg1: i32, %arg2: i32) -> (i32, i32) {
    %c0_i32 = arith.constant 0 : i32
    %c0_i32_0 = arith.constant 0 : i32
    %c0_i32_1 = arith.constant 0 : i32
    return %c0_i32, %c0_i32_0 : i32, i32
  }
  func.func @transform_9(%arg0: i32, %arg1: i32, %arg2: i32) -> (i32, i32, i32) {
    %c0_i32 = arith.constant 0 : i32
    %c0_i32_0 = arith.constant 0 : i32
    return %arg0, %arg1, %c0_i32 : i32, i32, i32
  }
}

</mosaic_0001>

<bundles_post_ra>
// kernel: tpu_custom_call.1
= control target key start
LH: loop header
LB: loop body
LE: loop exit
PB: predicated region body
PF: predicated region fallthrough
CT: control target
= control target key end

     0   :  { %14 = vsyncpa [#allocation7], 0  ;;  %s3340_s0 = inlined_call_operand.vmem [shape: f32[2,128,64], index: 0, kind: input, shape index: {}]   ;;  %s3341_s1 = inlined_call_operand.vmem [shape: f32[2,256,64], index: 1, kind: input, shape index: {}]   ;;  %s3342_s2 = inlined_call_operand.vmem [shape: f32[2,256,64], index: 2, kind: input, shape index: {}]   ;;  %s3343_s3 = inlined_call_operand.vmem [shape: f32[64,128], index: 3, kind: input, shape index: {}]   ;;  %s3344_s4 = inlined_call_operand.vmem [shape: f32[1,128], index: 4, kind: input, shape index: {}]   ;;  %s3345_s5 = inlined_call_operand.vmem [shape: f32[64,128], index: 5, kind: input, shape index: {}]   ;;  %s3346_s6 = inlined_call_operand.vmem [shape: f32[1,128], index: 6, kind: input, shape index: {}]   ;;  %s3347_s7 = inlined_call_operand.vmem [shape: f32[64,128], index: 7, kind: input, shape index: {}]   ;;  %s3348_s8 = inlined_call_operand.vmem [shape: f32[1,128], index: 8, kind: input, shape index: {}]   ;;  %s3349_s9 = inlined_call_operand.hbm [shape: f32[2,128,128], index: 9, kind: output, shape index: {}]  }
   0x1   :  { %16 = vsyncpa [#allocation7 + $0x1], 0  ;;  %s2621_s30 = smov 0   ;;  %s2623_s10 = smov 0  }
   0x2   :  { %s2625_s11 = smov 0   ;;  %s2627_s12 = smov 0  }
   0x3   :  { %s2629_s13 = smov 0   ;;  %s2631_s14 = smov 0  }
   0x4   :  { %s2633_s15 = smov 0   ;;  %s2635_s16 = smov 0  }
   0x5 LB: > { %3359 = sst [smem:[#allocation9_spill]] %s2534_s30  ;;  %s2029_s17 = sadd.s32 4294967295, %s2562_s16   ;;  %s2562_s16 = sphi %s2635_s16, %s22_s16   ;;  %s2558_s15 = sphi %s2633_s15, %s3379_s15   ;;  %s2554_s14 = sphi %s2631_s14, %s3378_s14   ;;  %s2550_s13 = sphi %s2629_s13, %s3382_s13   ;;  %s2546_s12 = sphi %s2627_s12, %s3376_s12   ;;  %s2542_s11 = sphi %s2625_s11, %s3375_s11   ;;  %s2538_s10 = sphi %s2623_s10, %s3381_s10   ;;  %s2534_s30 = sphi %s2621_s30, %s3380_s30  }
   0x6   : > { %3360 = sst [smem:[#allocation10_spill]] %s2542_s11  ;;  %s2030_s18 = sadd.s32 4294967294, %s2562_s16  }
   0x7   : > { %3361 = sst [smem:[#allocation11_spill]] %s2554_s14  ;;  %s34_s19 = sadd.s32 1, %s2554_s14 }
   0x8   : > { %3362 = sst [smem:[#allocation12_spill]] %s2558_s15  ;;  %p35_p0 = scmp.ge.s32.totalorder %s34_s19, 2 }
   0x9   : > { %3363 = sst [smem:[#allocation13_spill]] %s2562_s16  ;;  %s41_s20 = sadd.s32 1, %s2558_s15 }
   0xa   : > { %p270_p1 = scmp.ne.s32.totalorder %s2542_s11, %s2538_s10  ;;  %p271_p2 = scmp.eq.s32.totalorder %s2029_s17, 3 }
   0xb   : > { %s3384_s19 = smov (%p35_p0, %s34_s19), 0  ;;  %s3386_s20 = smov (!%p35_p0, %s41_s20), %s2558_s15 }
   0xc   : > { %3364 = sst [smem:[#allocation14_spill]] %s3384_s19  ;;  %p2670_p3 = por %p271_p2, %p270_p1 }
   0xd   : > { %p276_p4 = scmp.ne.s32.totalorder %s2538_s10, %s2534_s30  ;;  %p43_p5 = scmp.ge.s32.totalorder %s3386_s20, 2 }
   0xe   : > { %p277_p6 = scmp.eq.s32.totalorder %s2030_s18, 3  ;;  %p2033_p7 = scmp.ge.s32.totalorder %s2562_s16, 1 }
   0xf   : > { %p352_p8 = scmp.lt.s32.totalorder %s2562_s16, 5  ;;  %s3388_s20 = smov (%p43_p5, %s3386_s20), 0 }
  0x10   : > { %3366 = sst [smem:[#allocation15_spill]] %s3388_s20  ;;  %p2680_p9 = por %p277_p6, %p276_p4 }
  0x11   : > { %p353_p10 = pnand %p2033_p7, %p352_p8  ;;  %s255_s23 = ssub.s32 %s2558_s15, %s3388_s20 }
  0x12   : > { %s3367_s22 = scalar_select %p2680_p9, 1, 0 }
  0x13   : > { %s260_s24 = sadd.s32 1, %s2542_s11  ;;  %p258_p11 = scmp.eq.s32.totalorder %s255_s23, 0 }
  0x14   : > { %3368 = sst [smem:[#allocation16_spill]] %s3367_s22  ;;  %356 = sbr.rel (%p353_p10) target bundleno = 1498 (0x5da), region = 56 }
  0x15   : > { %s2688_s25 = scalar_select %p258_p11, %s2542_s11, %s260_s24  }
  0x16   : > { %s3355_s26 = sand.u32 (!%p353_p10), 1, %s2538_s10   ;;  %p411_p12 = scmp.lt.s32.totalorder (!%p353_p10), %s2550_s13, 1 }
  0x17   : > { %3369 = sst [smem:[#allocation17_spill]] %s2688_s25  ;;  %s2034_s27 = sshll.u32 (!%p353_p10), %s3355_s26, 7 }
  0x18   : > { %s2037_s28 = sshll.u32 (!%p353_p10), %s2546_s12, 4  ;;  %s2711_s16 = scalar_lea.vmem (!%p353_p10), [#allocation6], %s2034_s27 }
  0x19   : > { %p423_p13 = scmp.lt.s32.totalorder (!%p353_p10), %s2037_s28, 31  ;;  %p2043_p0 = scmp.ne.s32.totalorder (!%p353_p10), %s2546_s12, 0 }
  0x1b   : > { %s412_s29 = scalar_select %p411_p12, %s2550_s13, 1 }
  0x1c   : > { %s3390_s28 = smov (!%p423_p13, %s2037_s28), 31  ;;  %445 = sbr.rel (%p2043_p0) target bundleno = 276 (0x114), region = 60 }
  0x1d   : > { %s2077_s17 = sshll.u32 %s412_s29, 7  ;;  %s2038_s18 = sshll.u32 %s412_s29, 5  ;;  %v470_v0 = vld [vmem:[%s3343_s3] sm:$0xff] (!%p2043_p0)  ;;  %v471_v1 = vld [vmem:[%s3343_s3 + $0x8] sm:$0xff] (!%p2043_p0)  ;;  %v472_v2 = vld [vmem:[%s3343_s3 + $0x10] sm:$0xff] (!%p2043_p0)  ;;  %vm489_vm0 = vcmask (!%p2043_p0), 523264  }
  0x1e   : > { %s2699_s24 = scalar_lea.vmem %s3340_s0, %s2077_s17  ;;  %s426_s19 = sadd.s32 %s2038_s18, %s3390_s28  ;;  %v478_v3 = vpack.c.bf16 (!%p2043_p0), %v471_v1, %v470_v0  ;;  %v473_v4 = vld [vmem:[%s3343_s3 + $0x18] sm:$0xff] (!%p2043_p0)  ;;  %v474_v6 = vld [vmem:[%s3343_s3 + $0x20] sm:$0xff] (!%p2043_p0)  ;;  %v475_v7 = vld [vmem:[%s3343_s3 + $0x28] sm:$0xff] (!%p2043_p0)  ;;  %vm627_vm1 = vcmask (!%p2043_p0), 7168   ;;  %v2564_v36 = vmov (!%p2043_p0), -inf   ;;  %v2565_v37 = vmov (!%p2043_p0), 0.0  }
  0x1f   : > { %s2039_s15 = sshll.u32 %s426_s19, 3  ;;  %v479_v5 = vpack.c.bf16 (!%p2043_p0), %v473_v4, %v472_v2  ;;  %v446_v8 = vld [vmem:[%s2699_s24] sm:$0xff] (!%p2043_p0)  ;;  %v447_v9 = vld [vmem:[%s2699_s24 + $0x8] sm:$0xff] (!%p2043_p0)  ;;  %v480_v14 = vpack.c.bf16 (!%p2043_p0), %v475_v7, %v474_v6  ;;  %v476_v15 = vld [vmem:[%s3343_s3 + $0x30] sm:$0xff] (!%p2043_p0)  ;;  %628 = vst.msk [vmem:[#allocation3] sm:$0xff] (!%p2043_p0), %vm627_vm1, %v2564_v36 }
  0x20   : > { %s2704_s11 = scalar_lea.vmem %s3341_s1, %s2039_s15  ;;  %s2709_s30 = scalar_lea.vmem %s3342_s2, %s2039_s15  ;;  %2147 = vmatprep.subr.bf16.mxu0 (!%p2043_p0), %v478_v3  ;;  %2283 = vmatprep.subr.bf16.mxu1 (!%p2043_p0), %v478_v3  ;;  %v454_v10 = vld [vmem:[%s2699_s24 + $0x40] sm:$0xff] (!%p2043_p0)  ;;  %v455_v11 = vld [vmem:[%s2699_s24 + $0x48] sm:$0xff] (!%p2043_p0)  ;;  %v462_v12 = vpack.c.bf16 (!%p2043_p0), %v447_v9, %v446_v8  ;;  %v477_v16 = vld [vmem:[%s3343_s3 + $0x38] sm:$0xff] (!%p2043_p0)  ;;  %629 = vst.msk [vmem:[#allocation3 + $0x8] sm:$0xff] (!%p2043_p0), %vm627_vm1, %v2564_v36 }
  0x21   : > { %2148 = vmatpush3.bf16.msra.mxu0 (!%p2043_p0), %v478_v3  ;;  %2287 = vmatpush3.bf16.msra.mxu1 (!%p2043_p0), %v478_v3  ;;  %v466_v13 = vpack.c.bf16 (!%p2043_p0), %v455_v11, %v454_v10  ;;  %v481_v17 = vpack.c.bf16 (!%p2043_p0), %v477_v16, %v476_v15  ;;  %v448_v18 = vld [vmem:[%s2699_s24 + $0x10] sm:$0xff] (!%p2043_p0)  ;;  %v449_v19 = vld [vmem:[%s2699_s24 + $0x18] sm:$0xff] (!%p2043_p0)  ;;  %v450_v22 = vld [vmem:[%s2699_s24 + $0x20] sm:$0xff] (!%p2043_p0)  ;;  %630 = vst.msk [vmem:[#allocation3 + $0x10] sm:$0xff] (!%p2043_p0), %vm627_vm1, %v2564_v36 }
  0x22   : > { %2149 = vmatprep.subr.bf16.mxu0 (!%p2043_p0), %v479_v5  ;;  %2284 = vmatprep.subr.bf16.mxu1 (!%p2043_p0), %v479_v5  ;;  %v456_v20 = vld [vmem:[%s2699_s24 + $0x50] sm:$0xff] (!%p2043_p0)  ;;  %v457_v21 = vld [vmem:[%s2699_s24 + $0x58] sm:$0xff] (!%p2043_p0)  ;;  %v451_v23 = vld [vmem:[%s2699_s24 + $0x28] sm:$0xff] (!%p2043_p0)  ;;  %v463_v26 = vpack.c.bf16 (!%p2043_p0), %v449_v19, %v448_v18  ;;  %631 = vst.msk [vmem:[#allocation3 + $0x18] sm:$0xff] (!%p2043_p0), %vm627_vm1, %v2564_v36 }
  0x23   : > { %2155 = vmatprep.mubr.msk.bf16.mxu0 %vm489_vm0, %v462_v12  ;;  %2163 = vmatprep.mubr.msk.bf16.mxu1 %vm489_vm0, %v466_v13  ;;  %v458_v24 = vld [vmem:[%s2699_s24 + $0x60] sm:$0xff]  ;;  %v459_v25 = vld [vmem:[%s2699_s24 + $0x68] sm:$0xff]  ;;  %v467_v27 = vpack.c.bf16 %v457_v21, %v456_v20  ;;  %v464_v28 = vpack.c.bf16 %v451_v23, %v450_v22  ;;  %v452_v30 = vld [vmem:[%s2699_s24 + $0x30] sm:$0xff]  ;;  %632 = vst.msk [vmem:[#allocation3 + $0x20] sm:$0xff] %vm627_vm1, %v2564_v36 }
  0x24   : > { %v468_v29 = vpack.c.bf16 %v459_v25, %v458_v24  ;;  %v453_v31 = vld [vmem:[%s2699_s24 + $0x38] sm:$0xff]  ;;  %v460_v32 = vld [vmem:[%s2699_s24 + $0x70] sm:$0xff]  ;;  %633 = vst.msk [vmem:[#allocation3 + $0x28] sm:$0xff] %vm627_vm1, %v2564_v36  ;;  %634 = vst.msk [vmem:[#allocation3 + $0x30] sm:$0xff] %vm627_vm1, %v2564_v36 }
  0x25   : > { %2150 = vmatpush3.bf16.msra.mxu0 %v479_v5  ;;  %2288 = vmatpush3.bf16.msra.mxu1 %v479_v5  ;;  %v461_v33 = vld [vmem:[%s2699_s24 + $0x78] sm:$0xff]  ;;  %v465_v34 = vpack.c.bf16 %v453_v31, %v452_v30  ;;  %635 = vst.msk [vmem:[#allocation3 + $0x38] sm:$0xff] %vm627_vm1, %v2564_v36  ;;  %636 = vst.msk [vmem:[#allocation3 + $0x40] sm:$0xff] %vm627_vm1, %v2564_v36  ;;  %v2044_v39 = vld [vmem:[%s3344_s4] ss:$0 sm:$0xff] }
  0x26   : > { %2151 = vmatprep.subr.bf16.mxu0 %v480_v14  ;;  %2285 = vmatprep.subr.bf16.mxu1 %v480_v14  ;;  %v469_v35 = vpack.c.bf16 %v461_v33, %v460_v32  ;;  %637 = vst.msk [vmem:[#allocation3 + $0x48] sm:$0xff] %vm627_vm1, %v2564_v36  ;;  %638 = vst.msk [vmem:[#allocation3 + $0x50] sm:$0xff] %vm627_vm1, %v2564_v36 }
  0x27   : > { %639 = vst.msk [vmem:[#allocation3 + $0x58] sm:$0xff] %vm627_vm1, %v2564_v36  ;;  %640 = vst.msk [vmem:[#allocation3 + $0x60] sm:$0xff] %vm627_vm1, %v2564_v36 }
  0x28   : > { %641 = vst.msk [vmem:[#allocation3 + $0x68] sm:$0xff] %vm627_vm1, %v2564_v36  ;;  %642 = vst.msk [vmem:[#allocation3 + $0x70] sm:$0xff] %vm627_vm1, %v2564_v36 }
  0x29   : > { %2152 = vmatpush3.bf16.msra.mxu0 %v480_v14  ;;  %2289 = vmatpush3.bf16.msra.mxu1 %v480_v14  ;;  %643 = vst.msk [vmem:[#allocation3 + $0x78] sm:$0xff] %vm627_vm1, %v2564_v36  ;;  %644 = vst.msk [vmem:[#allocation4] sm:$0xff] %vm627_vm1, %v2565_v37 }
  0x2a   : > { %2153 = vmatprep.subr.bf16.mxu0 %v481_v17  ;;  %2286 = vmatprep.subr.bf16.mxu1 %v481_v17  ;;  %645 = vst.msk [vmem:[#allocation4 + $0x8] sm:$0xff] %vm627_vm1, %v2565_v37  ;;  %646 = vst.msk [vmem:[#allocation4 + $0x10] sm:$0xff] %vm627_vm1, %v2565_v37 }
  0x2b   : > { %647 = vst.msk [vmem:[#allocation4 + $0x18] sm:$0xff] %vm627_vm1, %v2565_v37  ;;  %648 = vst.msk [vmem:[#allocation4 + $0x20] sm:$0xff] %vm627_vm1, %v2565_v37 }
  0x2c   : > { %649 = vst.msk [vmem:[#allocation4 + $0x28] sm:$0xff] %vm627_vm1, %v2565_v37  ;;  %650 = vst.msk [vmem:[#allocation4 + $0x30] sm:$0xff] %vm627_vm1, %v2565_v37 }
  0x2d   : > { %2154 = vmatpush3.bf16.msra.mxu0 %v481_v17  ;;  %2290 = vmatpush3.bf16.msra.mxu1 %v481_v17  ;;  %651 = vst.msk [vmem:[#allocation4 + $0x38] sm:$0xff] %vm627_vm1, %v2565_v37  ;;  %652 = vst.msk [vmem:[#allocation4 + $0x40] sm:$0xff] %vm627_vm1, %v2565_v37 }
  0x2e   : > { %653 = vst.msk [vmem:[#allocation4 + $0x48] sm:$0xff] %vm627_vm1, %v2565_v37  ;;  %654 = vst.msk [vmem:[#allocation4 + $0x50] sm:$0xff] %vm627_vm1, %v2565_v37 }
  0x2f   : > { %655 = vst.msk [vmem:[#allocation4 + $0x58] sm:$0xff] %vm627_vm1, %v2565_v37  ;;  %656 = vst.msk [vmem:[#allocation4 + $0x60] sm:$0xff] %vm627_vm1, %v2565_v37 }
  0x30   : > { %2156 = vmatmul.mubr.msk.bf16.vlgmr.msra.gmra.mrb[0].mxu0 %vm489_vm0, %v463_v26  ;;  %2164 = vmatmul.mubr.msk.bf16.vlgmr.msra.gmra.mrb[0].mxu1 %vm489_vm0, %v467_v27  ;;  %657 = vst.msk [vmem:[#allocation4 + $0x68] sm:$0xff] %vm627_vm1, %v2565_v37  ;;  %658 = vst.msk [vmem:[#allocation4 + $0x70] sm:$0xff] %vm627_vm1, %v2565_v37 }
  0x31   : > { %2159 = vmatprep.mubr.msk.bf16.mxu0 %vm489_vm0, %v464_v28  ;;  %2167 = vmatprep.mubr.msk.bf16.mxu1 %vm489_vm0, %v468_v29  ;;  %659 = vst.msk [vmem:[#allocation4 + $0x78] sm:$0xff] %vm627_vm1, %v2565_v37  ;;  %660 = vst [vmem:[#allocation5] sm:$0xff] %v2565_v37 }
  0x32   : > { %661 = vst [vmem:[#allocation5 + $0x8] sm:$0xff] %v2565_v37  ;;  %662 = vst [vmem:[#allocation5 + $0x10] sm:$0xff] %v2565_v37 }
  0x33   : > { %663 = vst [vmem:[#allocation5 + $0x18] sm:$0xff] %v2565_v37  ;;  %664 = vst [vmem:[#allocation5 + $0x20] sm:$0xff] %v2565_v37 }
  0x34   : > { %665 = vst [vmem:[#allocation5 + $0x28] sm:$0xff] %v2565_v37  ;;  %666 = vst [vmem:[#allocation5 + $0x30] sm:$0xff] %v2565_v37 }
  0x35   : > { %667 = vst [vmem:[#allocation5 + $0x38] sm:$0xff] %v2565_v37  ;;  %668 = vst [vmem:[#allocation5 + $0x40] sm:$0xff] %v2565_v37 }
  0x36   : > { %669 = vst [vmem:[#allocation5 + $0x48] sm:$0xff] %v2565_v37  ;;  %670 = vst [vmem:[#allocation5 + $0x50] sm:$0xff] %v2565_v37 }
  0x37   : > { %671 = vst [vmem:[#allocation5 + $0x58] sm:$0xff] %v2565_v37  ;;  %672 = vst [vmem:[#allocation5 + $0x60] sm:$0xff] %v2565_v37 }
  0x38   : > { %2160 = vmatmul.mubr.msk.bf16.gmra.mrb[4].mxu0 %vm489_vm0, %v465_v34  ;;  %2168 = vmatmul.mubr.msk.bf16.gmra.mrb[4].mxu1 %vm489_vm0, %v469_v35  ;;  %673 = vst [vmem:[#allocation5 + $0x68] sm:$0xff] %v2565_v37  ;;  %674 = vst [vmem:[#allocation5 + $0x70] sm:$0xff] %v2565_v37 }
  0x39   : > { %675 = vst [vmem:[#allocation5 + $0x78] sm:$0xff] %v2565_v37 }
 0x103   : > { %v2157_v38 = vpop.f32.mrb[0].mxu0  ;;  %v2165_v40 = vpop.f32.mrb[0].mxu1 }
 0x104   : > { %v548_v41 = vpop.f32.mrb[1].mxu0  ;;  %v580_v42 = vpop.f32.mrb[1].mxu1  ;;  %v557_v45 = vadd.f32 %v2157_v38, %v2044_v39  ;;  %v589_v46 = vadd.f32 %v2165_v40, %v2044_v39 }
 0x105   : > { %v2158_v43 = vpop.f32.mrb[2].mxu0  ;;  %v2166_v44 = vpop.f32.mrb[2].mxu1  ;;  %v549_v51 = vadd.f32 %v2044_v39, %v548_v41  ;;  %v581_v52 = vadd.f32 %v2044_v39, %v580_v42 }
 0x106   : > { %v560_v47 = vadd.f32 %v2158_v43, %v2044_v39  ;;  %v592_v48 = vadd.f32 %v2166_v44, %v2044_v39  ;;  %v551_v49 = vpop.f32.mrb[3].mxu0  ;;  %v583_v50 = vpop.f32.mrb[3].mxu1 }
 0x107   : > { %v552_v53 = vadd.f32 %v2044_v39, %v551_v49  ;;  %v584_v54 = vadd.f32 %v2044_v39, %v583_v50 }
 0x108   : > { %v612_v55 = vpack.c.bf16 %v560_v47, %v557_v45  ;;  %v616_v56 = vpack.c.bf16 %v592_v48, %v589_v46 }
 0x109   : > { %v611_v57 = vpack.c.bf16 %v552_v53, %v549_v51  ;;  %v615_v58 = vpack.c.bf16 %v584_v54, %v581_v52 }
 0x10a   : > { %620 = vst [vmem:[#allocation2 + $0x8] sm:$0xff] %v612_v55  ;;  %624 = vst [vmem:[#allocation2 + $0x28] sm:$0xff] %v616_v56 }
 0x10b   : > { %619 = vst [vmem:[#allocation2] sm:$0xff] %v611_v57  ;;  %623 = vst [vmem:[#allocation2 + $0x20] sm:$0xff] %v615_v58  ;;  %v2161_v59 = vpop.f32.mrb[4].mxu0  ;;  %v2169_v60 = vpop.f32.mrb[4].mxu1 }
 0x10c   : > { %v564_v61 = vpop.f32.mrb[5].mxu0  ;;  %v596_v62 = vpop.f32.mrb[5].mxu1  ;;  %v573_v1 = vadd.f32 %v2161_v59, %v2044_v39  ;;  %v605_v2 = vadd.f32 %v2169_v60, %v2044_v39 }
 0x10d   : > { %v2162_v63 = vpop.f32.mrb[6].mxu0  ;;  %v2170_v0 = vpop.f32.mrb[6].mxu1  ;;  %v565_v7 = vadd.f32 %v2044_v39, %v564_v61  ;;  %v597_v8 = vadd.f32 %v2044_v39, %v596_v62 }
 0x10e   : > { %v576_v3 = vadd.f32 %v2162_v63, %v2044_v39  ;;  %v608_v4 = vadd.f32 %v2170_v0, %v2044_v39  ;;  %v567_v5 = vpop.f32.mrb[7].mxu0  ;;  %v599_v6 = vpop.f32.mrb[7].mxu1 }
 0x10f   : > { %v568_v9 = vadd.f32 %v2044_v39, %v567_v5  ;;  %v600_v10 = vadd.f32 %v2044_v39, %v599_v6 }
 0x110   : > { %v614_v11 = vpack.c.bf16 %v576_v3, %v573_v1  ;;  %v618_v12 = vpack.c.bf16 %v608_v4, %v605_v2 }
 0x111   : > { %v613_v13 = vpack.c.bf16 %v568_v9, %v565_v7  ;;  %v617_v14 = vpack.c.bf16 %v600_v10, %v597_v8 }
 0x112   : > { %622 = vst [vmem:[#allocation2 + $0x18] sm:$0xff] %v614_v11  ;;  %626 = vst [vmem:[#allocation2 + $0x38] sm:$0xff] %v618_v12 }
 0x113   : > { %621 = vst [vmem:[#allocation2 + $0x10] sm:$0xff] %v613_v13  ;;  %625 = vst [vmem:[#allocation2 + $0x30] sm:$0xff] %v617_v14 }
 0x114 PF: > { %v700_v15 = vld [vmem:[%s3345_s5] sm:$0xff]  ;;  %v701_v16 = vld [vmem:[%s3345_s5 + $0x8] sm:$0xff]  ;;  %v702_v17 = vld [vmem:[%s3345_s5 + $0x10] sm:$0xff]  ;;  %vm719_vm2 = vcmask 523264   ;;  %vm1446_vm3 = vcmask 7168   ;;  %p2071_p1 = scmp.ne.s32.totalorder %s2546_s12, 1 }
 0x115   : > { %v708_v18 = vpack.c.bf16 %v701_v16, %v700_v15  ;;  %v703_v19 = vld [vmem:[%s3345_s5 + $0x18] sm:$0xff]  ;;  %v704_v21 = vld [vmem:[%s3345_s5 + $0x20] sm:$0xff]  ;;  %v705_v22 = vld [vmem:[%s3345_s5 + $0x28] sm:$0xff] }
 0x116   : > { %v709_v20 = vpack.c.bf16 %v703_v19, %v702_v17  ;;  %v676_v23 = vld [vmem:[%s2704_s11] sm:$0xff]  ;;  %v677_v24 = vld [vmem:[%s2704_s11 + $0x8] sm:$0xff]  ;;  %v710_v26 = vpack.c.bf16 %v705_v22, %v704_v21  ;;  %v706_v27 = vld [vmem:[%s3345_s5 + $0x30] sm:$0xff] }
 0x117   : > { %2171 = vmatprep.subr.bf16.mxu0 %v708_v18  ;;  %v692_v25 = vpack.c.bf16 %v677_v24, %v676_v23  ;;  %v707_v28 = vld [vmem:[%s3345_s5 + $0x38] sm:$0xff]  ;;  %v678_v30 = vld [vmem:[%s2704_s11 + $0x10] sm:$0xff]  ;;  %v680_v32 = vld [vmem:[%s2704_s11 + $0x20] sm:$0xff] }
 0x118   : > { %2172 = vmatpush3.bf16.msra.mxu0 %v708_v18  ;;  %v711_v29 = vpack.c.bf16 %v707_v28, %v706_v27  ;;  %v679_v31 = vld [vmem:[%s2704_s11 + $0x18] sm:$0xff]  ;;  %v681_v33 = vld [vmem:[%s2704_s11 + $0x28] sm:$0xff]  ;;  %v682_v36 = vld [vmem:[%s2704_s11 + $0x30] sm:$0xff] }
 0x119   : > { %2173 = vmatprep.subr.bf16.mxu0 %v709_v20  ;;  %2179 = vmatprep.mubr.msk.bf16.mxu0 %vm719_vm2, %v692_v25  ;;  %v693_v34 = vpack.c.bf16 %v679_v31, %v678_v30  ;;  %v694_v35 = vpack.c.bf16 %v681_v33, %v680_v32  ;;  %v683_v37 = vld [vmem:[%s2704_s11 + $0x38] sm:$0xff]  ;;  %v684_v38 = vld [vmem:[%s2704_s11 + $0x40] sm:$0xff]  ;;  %v685_v39 = vld [vmem:[%s2704_s11 + $0x48] sm:$0xff] }
 0x11a   : > { %v695_v40 = vpack.c.bf16 %v683_v37, %v682_v36  ;;  %v696_v41 = vpack.c.bf16 %v685_v39, %v684_v38  ;;  %v686_v42 = vld [vmem:[%s2704_s11 + $0x50] sm:$0xff]  ;;  %v687_v43 = vld [vmem:[%s2704_s11 + $0x58] sm:$0xff]  ;;  %v688_v44 = vld [vmem:[%s2704_s11 + $0x60] sm:$0xff] }
 0x11b   : > { %v689_v45 = vld [vmem:[%s2704_s11 + $0x68] sm:$0xff]  ;;  %v697_v46 = vpack.c.bf16 %v687_v43, %v686_v42  ;;  %v690_v48 = vld [vmem:[%s2704_s11 + $0x70] sm:$0xff]  ;;  %v691_v49 = vld [vmem:[%s2704_s11 + $0x78] sm:$0xff] }
 0x11c   : > { %2174 = vmatpush3.bf16.msra.mxu0 %v709_v20  ;;  %v698_v47 = vpack.c.bf16 %v689_v45, %v688_v44  ;;  %v699_v50 = vpack.c.bf16 %v691_v49, %v690_v48  ;;  %v1021_v51 = vld [vmem:[#allocation2] sm:$0xff]  ;;  %v1023_v30 = vld [vmem:[#allocation2 + $0x10] sm:$0xff]  ;;  %v1024_v31 = vld [vmem:[#allocation2 + $0x18] sm:$0xff] }
 0x11d   : > { %2175 = vmatprep.subr.bf16.mxu0 %v710_v26  ;;  %v2053_v53 = vld [vmem:[%s3346_s6] ss:$0 sm:$0xff]  ;;  %v1026_v33 = vld [vmem:[#allocation2 + $0x28] sm:$0xff]  ;;  %v875_v39 = vld [vmem:[%s3347_s7 + $0x10] sm:$0xff] }
 0x11e   : > { %v1025_v32 = vld [vmem:[#allocation2 + $0x20] sm:$0xff]  ;;  %v874_v37 = vld [vmem:[%s3347_s7 + $0x8] sm:$0xff]  ;;  %v879_v44 = vld [vmem:[%s3347_s7 + $0x30] sm:$0xff] }
 0x11f   : > { %v873_v36 = vld [vmem:[%s3347_s7] sm:$0xff]  ;;  %v878_v43 = vld [vmem:[%s3347_s7 + $0x28] sm:$0xff] }
 0x120   : > { %2176 = vmatpush3.bf16.msra.mxu0 %v710_v26  ;;  %v881_v38 = vpack.c.bf16 %v874_v37, %v873_v36  ;;  %v850_v48 = vld [vmem:[%s2709_s30 + $0x8] sm:$0xff] }
 0x121   : > { %2177 = vmatprep.subr.bf16.mxu0 %v711_v29 }
 0x122   : > { %2195 = vmatprep.subr.bf16.mxu1 %v881_v38 }
 0x123   : > { %2196 = vmatpush3.bf16.msra.mxu1 %v881_v38 }
 0x124   : > { %2178 = vmatpush3.bf16.msra.mxu0 %v711_v29  ;;  %v1022_v29 = vld [vmem:[#allocation2 + $0x8] sm:$0xff] }
 0x127   : > { %2180 = vmatmul.mubr.msk.bf16.vlgmr.msra.gmra.mrb[0].mxu0 %vm719_vm2, %v693_v34  ;;  %v1027_v34 = vld [vmem:[#allocation2 + $0x30] sm:$0xff] }
 0x128   : > { %2183 = vmatprep.mubr.msk.bf16.mxu0 %vm719_vm2, %v694_v35  ;;  %v1028_v35 = vld [vmem:[#allocation2 + $0x38] sm:$0xff] }
 0x12f   : > { %2184 = vmatmul.mubr.msk.bf16.gmra.mrb[4].mxu0 %vm719_vm2, %v695_v40  ;;  %v876_v40 = vld [vmem:[%s3347_s7 + $0x18] sm:$0xff] }
 0x130   : > { %2187 = vmatprep.mubr.msk.bf16.mxu0 %vm719_vm2, %v696_v41  ;;  %v877_v41 = vld [vmem:[%s3347_s7 + $0x20] sm:$0xff]  ;;  %v882_v42 = vpack.c.bf16 %v876_v40, %v875_v39 }
 0x131   : > { %v883_v45 = vpack.c.bf16 %v878_v43, %v877_v41  ;;  %v2955_v41 = vld [vmem:[#allocation3 + $0x10] sm:$0xff] }
 0x132   : > { %2197 = vmatprep.subr.bf16.mxu1 %v882_v42 }
 0x133   : > { %2198 = vmatpush3.bf16.msra.mxu1 %v882_v42 }
 0x134   : > { %2199 = vmatprep.subr.bf16.mxu1 %v883_v45 }
 0x137   : > { %2188 = vmatmul.mubr.msk.bf16.gmra.mrb[8].mxu0 %vm719_vm2, %v697_v46  ;;  %v880_v46 = vld [vmem:[%s3347_s7 + $0x38] sm:$0xff]  ;;  %2200 = vmatpush3.bf16.msra.mxu1 %v883_v45 }
 0x138   : > { %2191 = vmatprep.mubr.msk.bf16.mxu0 %vm719_vm2, %v698_v47  ;;  %v849_v47 = vld [vmem:[%s2709_s30] sm:$0xff] }
 0x139   : > { %v865_v49 = vpack.c.bf16 %v850_v48, %v849_v47 }
 0x13b   : > { %2203 = vmatprep.mubr.msk.bf16.mxu1 %vm719_vm2, %v865_v49 }
 0x13f   : > { %2192 = vmatmul.mubr.msk.bf16.gmra.mrb[12].mxu0 %vm719_vm2, %v699_v50  ;;  %v884_v50 = vpack.c.bf16 %v880_v46, %v879_v44  ;;  %v2958_v44 = vld [vmem:[#allocation3] sm:$0xff] }
 0x140   : > { %2235 = vmatprep.mubr.bf16.mxu0 %v1021_v51  ;;  %v851_v51 = vld [vmem:[%s2709_s30 + $0x10] sm:$0xff] }
 0x141   : > { %2201 = vmatprep.subr.bf16.mxu1 %v884_v50 }
 0x142   : > { %2202 = vmatpush3.bf16.msra.mxu1 %v884_v50 }
 0x1fa   : > { %v2181_v52 = vpop.f32.mrb[0].mxu0 }
 0x1fb   : > { %v778_v54 = vpop.f32.mrb[1].mxu0  ;;  %v787_v56 = vadd.f32 %v2181_v52, %v2053_v53  ;;  %v852_v52 = vld [vmem:[%s2709_s30 + $0x18] sm:$0xff] }
 0x1fc   : > { %v2182_v55 = vpop.f32.mrb[2].mxu0  ;;  %v779_v59 = vadd.f32 %v2053_v53, %v778_v54  ;;  %v854_v54 = vld [vmem:[%s2709_s30 + $0x28] sm:$0xff] }
 0x1fd   : > { %v790_v57 = vadd.f32 %v2182_v55, %v2053_v53  ;;  %v781_v58 = vpop.f32.mrb[3].mxu0  ;;  %v866_v55 = vpack.c.bf16 %v852_v52, %v851_v51  ;;  %v2967_v52 = vld [vmem:[#allocation3 + $0x18] sm:$0xff] }
 0x1fe   : > { %v782_v60 = vadd.f32 %v2053_v53, %v781_v58  ;;  %v856_v58 = vld [vmem:[%s2709_s30 + $0x38] sm:$0xff] }
 0x1ff   : > { %v842_v61 = vpack.c.bf16 %v790_v57, %v787_v56  ;;  %2204 = vmatmul.mubr.msk.bf16.vlgmr.msra.gmra.mrb[0].mxu1 %vm719_vm2, %v866_v55  ;;  %v855_v57 = vld [vmem:[%s2709_s30 + $0x30] sm:$0xff] }
 0x200   : > { %v841_v62 = vpack.c.bf16 %v782_v60, %v779_v59  ;;  %v857_v59 = vld [vmem:[%s2709_s30 + $0x40] sm:$0xff]  ;;  %v858_v60 = vld [vmem:[%s2709_s30 + $0x48] sm:$0xff] }
 0x202   : > { %2219 = vmatprep.subr.bf16.mxu0 %v841_v62  ;;  %v2185_v63 = vpop.f32.mrb[4].mxu0 }
 0x203   : > { %2220 = vmatpush3.bf16.xpose.msra.mxu0 %v841_v62  ;;  %v803_v0 = vadd.f32 %v2185_v63, %v2053_v53  ;;  %v794_v1 = vpop.f32.mrb[5].mxu0  ;;  %v869_v62 = vpack.c.bf16 %v858_v60, %v857_v59  ;;  %v859_v63 = vld [vmem:[%s2709_s30 + $0x50] sm:$0xff]  ;;  %v2986_v60 = vld [vmem:[#allocation3 + $0x20] sm:$0xff] }
 0x204   : > { %2221 = vmatprep.subr.bf16.mxu0 %v842_v61  ;;  %v795_v2 = vadd.f32 %v2053_v53, %v794_v1  ;;  %v2186_v3 = vpop.f32.mrb[6].mxu0  ;;  %v861_v1 = vld [vmem:[%s2709_s30 + $0x60] sm:$0xff] }
 0x205   : > { %v806_v4 = vadd.f32 %v2186_v3, %v2053_v53  ;;  %v797_v5 = vpop.f32.mrb[7].mxu0 }
 0x206   : > { %v798_v6 = vadd.f32 %v2053_v53, %v797_v5  ;;  %v863_v5 = vld [vmem:[%s2709_s30 + $0x70] sm:$0xff] }
 0x207   : > { %v844_v7 = vpack.c.bf16 %v806_v4, %v803_v0  ;;  %v860_v0 = vld [vmem:[%s2709_s30 + $0x58] sm:$0xff] }
 0x208   : > { %v843_v8 = vpack.c.bf16 %v798_v6, %v795_v2  ;;  %v862_v2 = vld [vmem:[%s2709_s30 + $0x68] sm:$0xff]  ;;  %v870_v3 = vpack.c.bf16 %v860_v0, %v859_v63  ;;  %v864_v6 = vld [vmem:[%s2709_s30 + $0x78] sm:$0xff] }
 0x209   : > { %v871_v4 = vpack.c.bf16 %v862_v2, %v861_v1 }
 0x20a   : > { %v2189_v9 = vpop.f32.mrb[8].mxu0 }
 0x20b   : > { %2222 = vmatpush3.bf16.xpose.msra.mxu0 %v842_v61  ;;  %v819_v10 = vadd.f32 %v2189_v9, %v2053_v53  ;;  %v810_v11 = vpop.f32.mrb[9].mxu0  ;;  %v868_v61 = vpack.c.bf16 %v856_v58, %v855_v57 }
 0x20c   : > { %2223 = vmatprep.subr.bf16.mxu0 %v843_v8  ;;  %v811_v12 = vadd.f32 %v2053_v53, %v810_v11  ;;  %v2190_v13 = vpop.f32.mrb[10].mxu0 }
 0x20d   : > { %v822_v14 = vadd.f32 %v2190_v13, %v2053_v53  ;;  %v813_v15 = vpop.f32.mrb[11].mxu0 }
 0x20e   : > { %v814_v16 = vadd.f32 %v2053_v53, %v813_v15 }
 0x20f   : > { %v846_v17 = vpack.c.bf16 %v822_v14, %v819_v10 }
 0x210   : > { %v845_v18 = vpack.c.bf16 %v814_v16, %v811_v12 }
 0x212   : > { %v2193_v19 = vpop.f32.mrb[12].mxu0 }
 0x213   : > { %2224 = vmatpush3.bf16.xpose.msra.mxu0 %v843_v8  ;;  %v835_v20 = vadd.f32 %v2193_v19, %v2053_v53  ;;  %v826_v21 = vpop.f32.mrb[13].mxu0 }
 0x214   : > { %2225 = vmatprep.subr.bf16.mxu0 %v844_v7  ;;  %v827_v22 = vadd.f32 %v2053_v53, %v826_v21  ;;  %v2194_v23 = vpop.f32.mrb[14].mxu0 }
 0x215   : > { %v838_v24 = vadd.f32 %v2194_v23, %v2053_v53  ;;  %v829_v25 = vpop.f32.mrb[15].mxu0 }
 0x216   : > { %v830_v26 = vadd.f32 %v2053_v53, %v829_v25  ;;  %v853_v53 = vld [vmem:[%s2709_s30 + $0x20] sm:$0xff] }
 0x217   : > { %v848_v27 = vpack.c.bf16 %v838_v24, %v835_v20  ;;  %v867_v56 = vpack.c.bf16 %v854_v54, %v853_v53  ;;  %v2947_v25 = vld [vmem:[%s3348_s8] ss:$0 sm:$0xff]  ;;  %v2972_v53 = vld [vmem:[#allocation3 + $0x8] sm:$0xff] }
 0x218   : > { %v847_v28 = vpack.c.bf16 %v830_v26, %v827_v22 }
 0x219   : > { %2207 = vmatprep.mubr.msk.bf16.mxu1 %vm719_vm2, %v867_v56 }
 0x21a   : > { %2208 = vmatmul.mubr.msk.bf16.gmra.mrb[4].mxu1 %vm719_vm2, %v868_v61 }
 0x21b   : > { %2226 = vmatpush3.bf16.xpose.msra.mxu0 %v844_v7  ;;  %2211 = vmatprep.mubr.msk.bf16.mxu1 %vm719_vm2, %v869_v62  ;;  %v872_v7 = vpack.c.bf16 %v864_v6, %v863_v5  ;;  %v2990_v62 = vld [vmem:[#allocation3 + $0x38] sm:$0xff] }
 0x21c   : > { %2227 = vmatprep.subr.bf16.mxu0 %v845_v18 }
 0x222   : > { %2212 = vmatmul.mubr.msk.bf16.gmra.mrb[8].mxu1 %vm719_vm2, %v870_v3 }
 0x223   : > { %2228 = vmatpush3.bf16.xpose.msra.mxu0 %v845_v18  ;;  %2215 = vmatprep.mubr.msk.bf16.mxu1 %vm719_vm2, %v871_v4 }
 0x224   : > { %2229 = vmatprep.subr.bf16.mxu0 %v846_v17 }
 0x22a   : > { %2216 = vmatmul.mubr.msk.bf16.gmra.mrb[12].mxu1 %vm719_vm2, %v872_v7 }
 0x22b   : > { %2230 = vmatpush3.bf16.xpose.msra.mxu0 %v846_v17  ;;  %v2566_v17 = vmov 0  }
 0x22c   : > { %2231 = vmatprep.subr.bf16.mxu0 %v847_v28  ;;  %2369 = vset.pattern.permute.xlu1 %v2566_v17 }
 0x22d   : > { %2368 = vset.pattern.permute.xlu0 %v2566_v17  ;;  %v3003_v17 = vld [vmem:[#allocation3 + $0x30] sm:$0xff] }
 0x233   : > { %2232 = vmatpush3.bf16.xpose.msra.mxu0 %v847_v28 }
 0x234   : > { %2233 = vmatprep.subr.bf16.mxu0 %v848_v27 }
 0x23b   : > { %2234 = vmatpush3.bf16.xpose.msra.mxu0 %v848_v27 }
 0x242   : > { %2236 = vmatmul.mubr.bf16.vlgmr.msra.gmra.mrb[16].mxu0 %v1022_v29 }
 0x243   : > { %2239 = vmatprep.mubr.bf16.mxu0 %v1023_v30 }
 0x24a   : > { %2240 = vmatmul.mubr.bf16.gmra.mrb[20].mxu0 %v1024_v31 }
 0x24b   : > { %2243 = vmatprep.mubr.bf16.mxu0 %v1025_v32 }
 0x252   : > { %2244 = vmatmul.mubr.bf16.gmra.mrb[24].mxu0 %v1026_v33 }
 0x253   : > { %2247 = vmatprep.mubr.bf16.mxu0 %v1027_v34 }
 0x25a   : > { %2248 = vmatmul.mubr.bf16.gmra.mrb[28].mxu0 %v1028_v35 }
 0x2d2   : > { %v2205_v26 = vpop.f32.mrb[0].mxu1 }
 0x2d3   : > { %v959_v27 = vadd.f32 %v2205_v26, %v2947_v25  ;;  %v950_v28 = vpop.f32.mrb[1].mxu1 }
 0x2d4   : > { %v951_v29 = vadd.f32 %v2947_v25, %v950_v28  ;;  %v2206_v30 = vpop.f32.mrb[2].mxu1  ;;  %v3007_v28 = vld [vmem:[#allocation3 + $0x28] sm:$0xff] }
 0x2d5   : > { %v962_v31 = vadd.f32 %v2206_v30, %v2947_v25  ;;  %v953_v32 = vpop.f32.mrb[3].mxu1 }
 0x2d6   : > { %v954_v33 = vadd.f32 %v2947_v25, %v953_v32 }
 0x2d7   : > { %v1014_v34 = vpack.c.bf16 %v962_v31, %v959_v27 }
 0x2d8   : > { %v1013_v35 = vpack.c.bf16 %v954_v33, %v951_v29 }
 0x2da   : > { %2251 = vmatprep.subr.bf16.mxu1 %v1013_v35 }
 0x2db   : > { %2252 = vmatpush3.bf16.msra.mxu1 %v1013_v35  ;;  %v3017_v35 = vld [vmem:[#allocation3 + $0x40] sm:$0xff] }
 0x2dc   : > { %2253 = vmatprep.subr.bf16.mxu1 %v1014_v34 }
 0x2df   : > { %2254 = vmatpush3.bf16.msra.mxu1 %v1014_v34 }
 0x2ed   : > { %v2209_v36 = vpop.f32.mrb[4].mxu1 }
 0x2ee   : > { %v975_v37 = vadd.f32 %v2209_v36, %v2947_v25  ;;  %v966_v38 = vpop.f32.mrb[5].mxu1 }
 0x2ef   : > { %v967_v39 = vadd.f32 %v2947_v25, %v966_v38  ;;  %v2210_v40 = vpop.f32.mrb[6].mxu1 }
 0x2f0   : > { %v978_v42 = vadd.f32 %v2210_v40, %v2947_v25  ;;  %v969_v43 = vpop.f32.mrb[7].mxu1 }
 0x2f1   : > { %v970_v45 = vadd.f32 %v2947_v25, %v969_v43 }
 0x2f2   : > { %v1016_v47 = vpack.c.bf16 %v978_v42, %v975_v37 }
 0x2f3   : > { %v1015_v50 = vpack.c.bf16 %v970_v45, %v967_v39  ;;  %v3024_v39 = vld [vmem:[#allocation3 + $0x58] sm:$0xff] }
 0x2f5   : > { %2255 = vmatprep.subr.bf16.mxu1 %v1015_v50  ;;  %v2213_v57 = vpop.f32.mrb[8].mxu1 }
 0x2f6   : > { %2256 = vmatpush3.bf16.msra.mxu1 %v1015_v50  ;;  %v982_v59 = vpop.f32.mrb[9].mxu1  ;;  %v991_v63 = vadd.f32 %v2213_v57, %v2947_v25  ;;  %v3041_v57 = vld [vmem:[#allocation3 + $0x48] sm:$0xff] }
 0x2f7   : > { %2257 = vmatprep.subr.bf16.mxu1 %v1016_v47  ;;  %v2214_v61 = vpop.f32.mrb[10].mxu1  ;;  %v983_v0 = vadd.f32 %v2947_v25, %v982_v59 }
 0x2f8   : > { %v985_v1 = vpop.f32.mrb[11].mxu1  ;;  %v994_v3 = vadd.f32 %v2214_v61, %v2947_v25 }
 0x2f9   : > { %v986_v4 = vadd.f32 %v2947_v25, %v985_v1  ;;  %v3053_v1 = vld [vmem:[#allocation3 + $0x60] sm:$0xff] }
 0x2fa   : > { %2258 = vmatpush3.bf16.msra.mxu1 %v1016_v47  ;;  %v1018_v26 = vpack.c.bf16 %v994_v3, %v991_v63 }
 0x2fb   : > { %v1017_v27 = vpack.c.bf16 %v986_v4, %v983_v0 }
 0x2fd   : > { %v2217_v30 = vpop.f32.mrb[12].mxu1  ;;  %2259 = vmatprep.subr.bf16.mxu1 %v1017_v27 }
 0x2fe   : > { %v998_v33 = vpop.f32.mrb[13].mxu1  ;;  %2260 = vmatpush3.bf16.msra.mxu1 %v1017_v27  ;;  %v1007_v36 = vadd.f32 %v2217_v30, %v2947_v25  ;;  %v3071_v27 = vld [vmem:[#allocation3 + $0x70] sm:$0xff] }
 0x2ff   : > { %v999_v37 = vadd.f32 %v2947_v25, %v998_v33  ;;  %v2218_v38 = vpop.f32.mrb[14].mxu1  ;;  %2261 = vmatprep.subr.bf16.mxu1 %v1018_v26 }
 0x300   : > { %v1010_v40 = vadd.f32 %v2218_v38, %v2947_v25  ;;  %v1001_v42 = vpop.f32.mrb[15].mxu1 }
 0x301   : > { %v1002_v45 = vadd.f32 %v2947_v25, %v1001_v42 }
 0x302   : > { %2262 = vmatpush3.bf16.msra.mxu1 %v1018_v26 }
 0x315   : > { %v2896_v8 = vpop.f32.mrb[16].mxu0 }
 0x316   : > { %1146 = vmax.xlane.f32.xlu1 %v2896_v8  ;;  %v2899_v9 = vpop.f32.mrb[17].mxu0 }
 0x317   : > { %1142 = vmax.xlane.f32.xlu0 %v2899_v9  ;;  %v2902_v10 = vpop.f32.mrb[18].mxu0 }
 0x318   : > { %v2904_v11 = vpop.f32.mrb[19].mxu0 }
 0x31a   : > { %1148 = vmax.xlane.f32.xlu1 %v2902_v10 }
 0x31b   : > { %1144 = vmax.xlane.f32.xlu0 %v2904_v11 }
 0x31d   : > { %v2908_v12 = vpop.f32.mrb[20].mxu0 }
 0x31e   : > { %v2910_v13 = vpop.f32.mrb[21].mxu0 }
 0x31f   : > { %1150 = vmax.xlane.f32.xlu0 %v2910_v13  ;;  %v2913_v14 = vpop.f32.mrb[22].mxu0 }
 0x320   : > { %1156 = vmax.xlane.f32.xlu1 %v2913_v14  ;;  %v2916_v15 = vpop.f32.mrb[23].mxu0 }
 0x323   : > { %1154 = vmax.xlane.f32.xlu0 %v2908_v12 }
 0x324   : > { %1152 = vmax.xlane.f32.xlu1 %v2916_v15 }
 0x325   : > { %v2920_v16 = vpop.f32.mrb[24].mxu0 }
 0x326   : > { %v2922_v18 = vpop.f32.mrb[25].mxu0 }
 0x327   : > { %v2924_v19 = vpop.f32.mrb[26].mxu0  ;;  %1158 = vmax.xlane.f32.xlu0 %v2922_v18 }
 0x328   : > { %1164 = vmax.xlane.f32.xlu1 %v2924_v19  ;;  %v2928_v20 = vpop.f32.mrb[27].mxu0 }
 0x32b   : > { %1162 = vmax.xlane.f32.xlu0 %v2920_v16 }
 0x32c   : > { %1160 = vmax.xlane.f32.xlu1 %v2928_v20 }
 0x32d   : > { %v2932_v21 = vpop.f32.mrb[28].mxu0 }
 0x32e   : > { %v2934_v22 = vpop.f32.mrb[29].mxu0 }
 0x32f   : > { %v2936_v23 = vpop.f32.mrb[30].mxu0  ;;  %1166 = vmax.xlane.f32.xlu0 %v2934_v22 }
 0x330   : > { %1172 = vmax.xlane.f32.xlu1 %v2936_v23  ;;  %v2940_v24 = vpop.f32.mrb[31].mxu0 }
 0x333   : > { %1170 = vmax.xlane.f32.xlu0 %v2932_v21 }
 0x334   : > { %1168 = vmax.xlane.f32.xlu1 %v2940_v24 }
 0x3a3   : > { %v1147_v46 = vpop.xlane.xlu1 %1146 }
 0x3a4   : > { %v2962_v48 = vmax.f32 %v2955_v41, %v1147_v46  ;;  %v1143_v49 = vpop.xlane.xlu0 %1142 }
 0x3a5   : > { %v2965_v51 = vmax.f32 %v2958_v44, %v1143_v49  ;;  %v1020_v49 = vpack.c.bf16 %v1010_v40, %v1007_v36 }
 0x3a6   : > { %1714 = vst.msk [vmem:[#allocation3 + $0x10] sm:$0xff] %vm1446_vm3, %v2962_v48  ;;  %1250 = vperm.xlu1 %2369, %v2962_v48  }
 0x3a7   : > { %1712 = vst.msk [vmem:[#allocation3] sm:$0xff] %vm1446_vm3, %v2965_v51  ;;  %v1149_v54 = vpop.xlane.xlu1 %1148  ;;  %1240 = vperm.xlu0 %2368, %v2965_v51   ;;  %v1190_v59 = vsub.f32 %v2958_v44, %v2965_v51 }
 0x3a8   : > { %v2978_v55 = vmax.f32 %v2967_v52, %v1149_v54  ;;  %v1145_v56 = vpop.xlane.xlu0 %1144  ;;  %v3036_v54 = vld [vmem:[#allocation3 + $0x50] sm:$0xff] }
 0x3a9   : > { %v2981_v58 = vmax.f32 %v2972_v53, %v1145_v56  ;;  %v1019_v56 = vpack.c.bf16 %v1002_v45, %v999_v37  ;;  %v1206_v51 = vmul.f32 1.442695, %v1190_v59 }
 0x3aa   : > { %1715 = vst.msk [vmem:[#allocation3 + $0x18] sm:$0xff] %vm1446_vm3, %v2978_v55  ;;  %1255 = vperm.xlu1 %2369, %v2978_v55   ;;  %v1193_v3 = vsub.f32 %v2967_v52, %v2978_v55 }
 0x3ab   : > { %1713 = vst.msk [vmem:[#allocation3 + $0x8] sm:$0xff] %vm1446_vm3, %v2981_v58  ;;  %2263 = vmatprep.subr.bf16.mxu1 %v1019_v56  ;;  %v1191_v30 = vsub.f32 %v2972_v53, %v2981_v58  ;;  %2370 = vpow2.f32 %v1206_v51 }
 0x3ac   : > { %v1151_v2 = vpop.xlane.xlu0 %1150  ;;  %2264 = vmatpush3.bf16.msra.mxu1 %v1019_v56 }
 0x3ad   : > { %v2997_v5 = vmax.f32 %v2986_v60, %v1151_v2  ;;  %v1157_v6 = vpop.xlane.xlu1 %1156  ;;  %2265 = vmatprep.subr.bf16.mxu1 %v1020_v49  ;;  %v3058_v2 = vld [vmem:[#allocation3 + $0x78] sm:$0xff]  ;;  %v1208_v40 = vmul.f32 1.442695, %v1191_v30 }
 0x3ae   : > { %v3000_v7 = vmax.f32 %v2990_v62, %v1157_v6  ;;  %1245 = vperm.xlu1 %2369, %v2981_v58   ;;  %v1192_v58 = vsub.f32 %v2955_v41, %v2962_v48 }
 0x3af   : > { %1716 = vst.msk [vmem:[#allocation3 + $0x20] sm:$0xff] %vm1446_vm3, %v2997_v5 }
 0x3b0   : > { %1719 = vst.msk [vmem:[#allocation3 + $0x38] sm:$0xff] %vm1446_vm3, %v3000_v7  ;;  %v1155_v29 = vpop.xlane.xlu0 %1154  ;;  %2266 = vmatpush3.bf16.msra.mxu1 %v1020_v49  ;;  %v1210_v42 = vmul.f32 1.442695, %v1192_v58 }
 0x3b1   : > { %v3012_v31 = vmax.f32 %v3003_v17, %v1155_v29  ;;  %v1153_v32 = vpop.xlane.xlu1 %1152  ;;  %v1139_v29 = vld [vmem:[#allocation3 + $0x68] sm:$0xff] }
 0x3b2   : > { %v3015_v34 = vmax.f32 %v3007_v28, %v1153_v32  ;;  %v1212_v32 = vmul.f32 1.442695, %v1193_v3 }
 0x3b3   : > { %1718 = vst.msk [vmem:[#allocation3 + $0x30] sm:$0xff] %vm1446_vm3, %v3012_v31  ;;  %1270 = vperm.xlu1 %2369, %v3012_v31  }
 0x3b4   : > { %1717 = vst.msk [vmem:[#allocation3 + $0x28] sm:$0xff] %vm1446_vm3, %v3015_v34  ;;  %v1159_v43 = vpop.xlane.xlu0 %1158  ;;  %v1195_v33 = vsub.f32 %v3007_v28, %v3015_v34  ;;  %2372 = vpow2.f32 %v1212_v32  ;;  %v1197_v28 = vsub.f32 %v2990_v62, %v3000_v7 }
 0x3b5   : > { %v1165_v46 = vpop.xlane.xlu1 %1164  ;;  %v3031_v47 = vmax.f32 %v3017_v35, %v1159_v43  ;;  %2374 = vpow2.f32 %v1208_v40  ;;  %v1194_v43 = vsub.f32 %v2986_v60, %v2997_v5  ;;  %v3104_v48 = vpop.eup %2370 }
 0x3b6   : > { %v3034_v50 = vmax.f32 %v3024_v39, %v1165_v46  ;;  %v1220_v45 = vmul.f32 1.442695, %v1197_v28 }
 0x3b7   : > { %1720 = vst.msk [vmem:[#allocation3 + $0x40] sm:$0xff] %vm1446_vm3, %v3031_v47  ;;  %1260 = vperm.xlu1 %2369, %v2997_v5   ;;  %v1214_v62 = vmul.f32 1.442695, %v1194_v43 }
 0x3b8   : > { %1723 = vst.msk [vmem:[#allocation3 + $0x58] sm:$0xff] %vm1446_vm3, %v3034_v50  ;;  %v1163_v25 = vpop.xlane.xlu0 %1162  ;;  %v1201_v41 = vsub.f32 %v3024_v39, %v3034_v50 }
 0x3b9   : > { %v1161_v61 = vpop.xlane.xlu1 %1160  ;;  %v3048_v63 = vmax.f32 %v3036_v54, %v1163_v25 }
 0x3ba   : > { %v3051_v0 = vmax.f32 %v3041_v57, %v1161_v61  ;;  %v1228_v60 = vmul.f32 1.442695, %v1201_v41 }
 0x3bb   : > { %1722 = vst.msk [vmem:[#allocation3 + $0x50] sm:$0xff] %vm1446_vm3, %v3048_v63  ;;  %1265 = vperm.xlu1 %2369, %v3015_v34   ;;  %v1216_v34 = vmul.f32 1.442695, %v1195_v33  ;;  %v1200_v49 = vsub.f32 %v3036_v54, %v3048_v63 }
 0x3bc   : > { %1721 = vst.msk [vmem:[#allocation3 + $0x48] sm:$0xff] %vm1446_vm3, %v3051_v0  ;;  %1285 = vperm.xlu0 %2368, %v3051_v0   ;;  %v1167_v44 = vpop.xlane.xlu0 %1166  ;;  %v1199_v5 = vsub.f32 %v3041_v57, %v3051_v0  ;;  %v1198_v57 = vsub.f32 %v3017_v35, %v3031_v47 }
 0x3bd   : > { %v1173_v4 = vpop.xlane.xlu1 %1172  ;;  %v3066_v6 = vmax.f32 %v3053_v1, %v1167_v44  ;;  %2376 = vpow2.f32 %v1216_v34  ;;  %v1226_v25 = vmul.f32 1.442695, %v1200_v49 }
 0x3be   : > { %v3069_v26 = vmax.f32 %v3058_v2, %v1173_v4  ;;  %2378 = vpow2.f32 %v1210_v42  ;;  %v3112_v46 = vpop.eup %2372 }
 0x3bf   : > { %1724 = vst.msk [vmem:[#allocation3 + $0x60] sm:$0xff] %vm1446_vm3, %v3066_v6  ;;  %1275 = vperm.xlu1 %2369, %v3000_v7   ;;  %v1196_v7 = vsub.f32 %v3003_v17, %v3012_v31  ;;  %2380 = vpow2.f32 %v1220_v45  ;;  %v1224_v17 = vmul.f32 1.442695, %v1199_v5  ;;  %v1202_v0 = vsub.f32 %v3053_v1, %v3066_v6 }
 0x3c0   : > { %v1205_v52 = vsub.f32 %v3058_v2, %v3069_v26  ;;  %1727 = vst.msk [vmem:[#allocation3 + $0x78] sm:$0xff] %vm1446_vm3, %v3069_v26  ;;  %1295 = vperm.xlu0 %2368, %v3034_v50   ;;  %v1171_v55 = vpop.xlane.xlu0 %1170  ;;  %2382 = vpow2.f32 %v1214_v62  ;;  %v3118_v50 = vpop.eup %2374 }
 0x3c1   : > { %v1169_v36 = vpop.xlane.xlu1 %1168  ;;  %v3086_v37 = vmax.f32 %v3071_v27, %v1171_v55  ;;  %v1218_v39 = vmul.f32 1.442695, %v1196_v7  ;;  %2384 = vpow2.f32 %v1228_v60  ;;  %v1230_v44 = vmul.f32 1.442695, %v1202_v0 }
 0x3c2   : > { %v1187_v38 = vmax.f32 %v1139_v29, %v1169_v36 }
 0x3c3   : > { %v1204_v53 = vsub.f32 %v3071_v27, %v3086_v37  ;;  %1726 = vst.msk [vmem:[#allocation3 + $0x70] sm:$0xff] %vm1446_vm3, %v3086_v37  ;;  %1280 = vperm.xlu1 %2369, %v3031_v47   ;;  %2386 = vpow2.f32 %v1218_v39 }
 0x3c4   : > { %1725 = vst.msk [vmem:[#allocation3 + $0x68] sm:$0xff] %vm1446_vm3, %v1187_v38  ;;  %1305 = vperm.xlu0 %2368, %v1187_v38   ;;  %v1203_v31 = vsub.f32 %v1139_v29, %v1187_v38  ;;  %2388 = vpow2.f32 %v1224_v17 }
 0x3c5   : > { %2390 = vpow2.f32 %v1226_v25 }
 0x3c6   : > { %v1232_v54 = vmul.f32 1.442695, %v1203_v31 }
 0x3c7   : > { %1290 = vperm.xlu1 %2369, %v3048_v63   ;;  %v3120_v56 = vpop.eup %2376  ;;  %v1222_v63 = vmul.f32 1.442695, %v1198_v57 }
 0x3c8   : > { %1315 = vperm.xlu0 %2368, %v3069_v26   ;;  %v3126_v59 = vpop.eup %2378  ;;  %2392 = vpow2.f32 %v1232_v54 }
 0x3c9   : > { %v3128_v61 = vpop.eup %2380  ;;  %2394 = vpow2.f32 %v1222_v63 }
 0x3ca   : > { %v3134_v35 = vpop.eup %2382  ;;  %2396 = vpow2.f32 %v1230_v44 }
 0x3cb   : > { %1300 = vperm.xlu1 %2369, %v3066_v6   ;;  %v3136_v47 = vpop.eup %2384 }
 0x3cc   : > { %1481 = vperm.xlu0 %2368, %v3104_v48  }
 0x3cd   : > { %v3140_v51 = vpop.eup %2386 }
 0x3ce   : > { %v3142_v3 = vpop.eup %2388 }
 0x3cf   : > { %1310 = vperm.xlu1 %2369, %v3086_v37   ;;  %v3146_v1 = vpop.eup %2390 }
 0x3d0   : > { %1496 = vperm.xlu0 %2368, %v3112_v46  }
 0x3d2   : > { %v3148_v4 = vpop.eup %2392 }
 0x3d3   : > { %1486 = vperm.xlu1 %2369, %v3118_v50   ;;  %v3152_v6 = vpop.eup %2394 }
 0x3d4   : > { %1506 = vperm.xlu0 %2368, %v3120_v56   ;;  %v3155_v29 = vpop.eup %2396 }
 0x3d7   : > { %1491 = vperm.xlu1 %2369, %v3126_v59  }
 0x3d8   : > { %1516 = vperm.xlu0 %2368, %v3128_v61  }
 0x3db   : > { %1501 = vperm.xlu1 %2369, %v3134_v35  }
 0x3dc   : > { %1536 = vperm.xlu0 %2368, %v3136_v47  }
 0x3df   : > { %1511 = vperm.xlu1 %2369, %v3140_v51  }
 0x3e0   : > { %1526 = vperm.xlu0 %2368, %v3142_v3  }
 0x3e3   : > { %1531 = vperm.xlu1 %2369, %v3146_v1  }
 0x3e4   : > { %1546 = vperm.xlu0 %2368, %v3148_v4  }
 0x3e7   : > { %1521 = vperm.xlu1 %2369, %v3152_v6  }
 0x3eb   : > { %1541 = vperm.xlu1 %2369, %v3155_v29  }
 0x425   : > { %v1251_v30 = vpop.permute.xlu1 %1250 }
 0x426   : > { %v1320_v55 = vsub.f32 %v2896_v8, %v1251_v30  ;;  %v1241_v32 = vpop.permute.xlu0 %1240 }
 0x427   : > { %v1318_v33 = vsub.f32 %v2899_v9, %v1241_v32 }
 0x428   : > { %v1338_v36 = vmul.f32 1.442695, %v1320_v55 }
 0x429   : > { %v1334_v38 = vmul.f32 1.442695, %v1318_v33  ;;  %v1256_v58 = vpop.permute.xlu1 %1255 }
 0x42a   : > { %2398 = vpow2.f32 %v1338_v36  ;;  %v1321_v40 = vsub.f32 %v2902_v10, %v1256_v58 }
 0x42b   : > { %2400 = vpow2.f32 %v1334_v38 }
 0x42c   : > { %v1340_v28 = vmul.f32 1.442695, %v1321_v40 }
 0x42d   : > { %v1246_v34 = vpop.permute.xlu1 %1245 }
 0x42e   : > { %2402 = vpow2.f32 %v1340_v28  ;;  %v1319_v42 = vsub.f32 %v2904_v11, %v1246_v34 }
 0x430   : > { %v1336_v43 = vmul.f32 1.442695, %v1319_v42 }
 0x432   : > { %2404 = vpow2.f32 %v1336_v43  ;;  %v1271_v45 = vpop.permute.xlu1 %1270 }
 0x433   : > { %v1324_v8 = vsub.f32 %v2908_v12, %v1271_v45 }
 0x434   : > { %v2399_v41 = vpop.eup %2398 }
 0x435   : > { %v2401_v62 = vpop.eup %2400  ;;  %v1346_v9 = vmul.f32 1.442695, %v1324_v8  ;;  %1402 = vadd.xlane.f32.xlu0 %v2399_v41 }
 0x436   : > { %1398 = vadd.xlane.f32.xlu1 %v2401_v62  ;;  %v1261_v7 = vpop.permute.xlu1 %1260 }
 0x437   : > { %2406 = vpow2.f32 %v1346_v9  ;;  %v1322_v10 = vsub.f32 %v2910_v13, %v1261_v7 }
 0x438   : > { %v2403_v60 = vpop.eup %2402 }
 0x439   : > { %v1342_v5 = vmul.f32 1.442695, %v1322_v10  ;;  %v1576_v39 = vpack.c.bf16 %v2403_v60, %v2399_v41 }
 0x43a   : > { %1404 = vadd.xlane.f32.xlu1 %v2403_v60  ;;  %v1266_v49 = vpop.permute.xlu1 %1265 }
 0x43b   : > { %2408 = vpow2.f32 %v1342_v5  ;;  %v1323_v11 = vsub.f32 %v2916_v15, %v1266_v49  ;;  %v1286_v17 = vpop.permute.xlu0 %1285 }
 0x43c   : > { %v2405_v31 = vpop.eup %2404  ;;  %v1327_v25 = vsub.f32 %v2928_v20, %v1286_v17 }
 0x43d   : > { %v1344_v12 = vmul.f32 1.442695, %v1323_v11  ;;  %1400 = vadd.xlane.f32.xlu0 %v2405_v31  ;;  %v1575_v57 = vpack.c.bf16 %v2405_v31, %v2401_v62 }
 0x43e   : > { %v1276_v54 = vpop.permute.xlu1 %1275  ;;  %v1352_v30 = vmul.f32 1.442695, %v1327_v25  ;;  %v1234_v25 = vmul.f32 1.442695, %v1204_v53 }
 0x43f   : > { %2410 = vpow2.f32 %v1344_v12  ;;  %v1325_v63 = vsub.f32 %v2913_v14, %v1276_v54  ;;  %v1296_v13 = vpop.permute.xlu0 %1295  ;;  %2267 = vmatprep.mubr.bf16.mxu1 %v1575_v57  ;;  %v1236_v54 = vmul.f32 1.442695, %v1205_v52 }
 0x440   : > { %2268 = vmatmul.mubr.bf16.vlgmr.msra.gmra.mrb[16].mxu1 %v1576_v39  ;;  %v1329_v55 = vsub.f32 %v2924_v19, %v1296_v13 }
 0x441   : > { %v2407_v0 = vpop.eup %2406  ;;  %v1348_v44 = vmul.f32 1.442695, %v1325_v63 }
 0x442   : > { %1410 = vadd.xlane.f32.xlu0 %v2407_v0  ;;  %v1281_v15 = vpop.permute.xlu1 %1280  ;;  %v1356_v38 = vmul.f32 1.442695, %v1329_v55 }
 0x443   : > { %2412 = vpow2.f32 %v1348_v44  ;;  %v1326_v32 = vsub.f32 %v2922_v18, %v1281_v15  ;;  %v1306_v33 = vpop.permute.xlu0 %1305 }
 0x444   : > { %2414 = vpow2.f32 %v1352_v30  ;;  %v1331_v14 = vsub.f32 %v2940_v24, %v1306_v33 }
 0x445   : > { %v2409_v36 = vpop.eup %2408  ;;  %v1350_v20 = vmul.f32 1.442695, %v1326_v32 }
 0x446   : > { %1406 = vadd.xlane.f32.xlu0 %v2409_v36  ;;  %v1291_v58 = vpop.permute.xlu1 %1290  ;;  %v1360_v42 = vmul.f32 1.442695, %v1331_v14 }
 0x447   : > { %2416 = vpow2.f32 %v1350_v20  ;;  %v1328_v40 = vsub.f32 %v2920_v16, %v1291_v58  ;;  %v1316_v28 = vpop.permute.xlu0 %1315 }
 0x448   : > { %2418 = vpow2.f32 %v1356_v38  ;;  %v1333_v43 = vsub.f32 %v2936_v23, %v1316_v28  ;;  %v1366_v38 = vld [vmem:[#allocation4] sm:$0xff] }
 0x449   : > { %v2411_v34 = vpop.eup %2410  ;;  %v1354_v19 = vmul.f32 1.442695, %v1328_v40  ;;  %v1382_v40 = vmul.f32 %v3104_v48, %v1366_v38  ;;  %v1372_v48 = vld [vmem:[#allocation4 + $0x30] sm:$0xff] }
 0x44a   : > { %v1301_v18 = vpop.permute.xlu1 %1300  ;;  %v1577_v45 = vpack.c.bf16 %v2411_v34, %v2409_v36  ;;  %v1364_v62 = vmul.f32 1.442695, %v1333_v43  ;;  %v1368_v36 = vld [vmem:[#allocation4 + $0x10] sm:$0xff] }
 0x44b   : > { %2420 = vpow2.f32 %v1354_v19  ;;  %v1330_v8 = vsub.f32 %v2934_v22, %v1301_v18  ;;  %v1384_v14 = vmul.f32 %v3126_v59, %v1368_v36  ;;  %v1369_v19 = vld [vmem:[#allocation4 + $0x18] sm:$0xff]  ;;  %v1367_v18 = vld [vmem:[#allocation4 + $0x8] sm:$0xff] }
 0x44c   : > { %2271 = vmatprep.mubr.bf16.mxu1 %v1577_v45  ;;  %2422 = vpow2.f32 %v1360_v42  ;;  %v1385_v43 = vmul.f32 %v3112_v46, %v1369_v19 }
 0x44d   : > { %v2413_v41 = vpop.eup %2412  ;;  %v1358_v24 = vmul.f32 1.442695, %v1330_v8 }
 0x44e   : > { %1412 = vadd.xlane.f32.xlu1 %v2413_v41  ;;  %v1311_v9 = vpop.permute.xlu1 %1310  ;;  %v1578_v16 = vpack.c.bf16 %v2413_v41, %v2407_v0  ;;  %v2415_v10 = vpop.eup %2414  ;;  %v1383_v41 = vmul.f32 %v3118_v50, %v1367_v18  ;;  %v1373_v50 = vld [vmem:[#allocation4 + $0x38] sm:$0xff]  ;;  %v1378_v18 = vld [vmem:[#allocation4 + $0x60] sm:$0xff] }
 0x44f   : > { %2424 = vpow2.f32 %v1358_v24  ;;  %v1332_v7 = vsub.f32 %v2932_v21, %v1311_v9  ;;  %v3186_v0 = vpop.permute.xlu0 %1481 }
 0x450   : > { %2272 = vmatmul.mubr.bf16.gmra.mrb[20].mxu1 %v1578_v16  ;;  %2426 = vpow2.f32 %v1364_v62  ;;  %v1388_v62 = vmul.f32 %v3140_v51, %v1372_v48  ;;  %v1370_v16 = vld [vmem:[#allocation4 + $0x20] sm:$0xff] }
 0x451   : > { %v2417_v60 = vpop.eup %2416  ;;  %v1362_v23 = vmul.f32 1.442695, %v1332_v7  ;;  %v1386_v46 = vmul.f32 %v3134_v35, %v1370_v16  ;;  %v1464_v16 = vld [vmem:[#allocation5 + $0x8] sm:$0xff] }
 0x452   : > { %1408 = vadd.xlane.f32.xlu1 %v2411_v34  ;;  %v1579_v5 = vpack.c.bf16 %v2415_v10, %v2417_v60  ;;  %v2419_v22 = vpop.eup %2418  ;;  %v3188_v44 = vpop.permute.xlu1 %1486 }
 0x453   : > { %2428 = vpow2.f32 %v1362_v23  ;;  %v3190_v27 = vpop.permute.xlu0 %1496  ;;  %v1389_v23 = vmul.f32 %v3128_v61, %v1373_v50  ;;  %v1374_v61 = vld [vmem:[#allocation4 + $0x40] sm:$0xff]  ;;  %v1560_v50 = vmul.f32 %v3188_v44, %v1464_v16 }
 0x454   : > { %2275 = vmatprep.mubr.bf16.mxu1 %v1579_v5  ;;  %2430 = vpow2.f32 %v1234_v25  ;;  %v1375_v25 = vld [vmem:[#allocation4 + $0x48] sm:$0xff] }
 0x455   : > { %v2421_v39 = vpop.eup %2420  ;;  %2432 = vpow2.f32 %v1236_v54  ;;  %v1391_v38 = vmul.f32 %v3142_v3, %v1375_v25 }
 0x456   : > { %1420 = vadd.xlane.f32.xlu1 %v2419_v22  ;;  %1418 = vadd.xlane.f32.xlu0 %v2421_v39  ;;  %v1580_v49 = vpack.c.bf16 %v2419_v22, %v2421_v39  ;;  %v2423_v11 = vpop.eup %2422  ;;  %v3192_v37 = vpop.permute.xlu1 %1491  ;;  %v1371_v22 = vld [vmem:[#allocation4 + $0x28] sm:$0xff] }
 0x457   : > { %v3194_v53 = vpop.permute.xlu0 %1506  ;;  %v1387_v51 = vmul.f32 %v3120_v56, %v1371_v22  ;;  %v1390_v56 = vmul.f32 %v3152_v6, %v1374_v61  ;;  %v1379_v6 = vld [vmem:[#allocation4 + $0x68] sm:$0xff] }
 0x458   : > { %2276 = vmatmul.mubr.bf16.gmra.mrb[24].mxu1 %v1580_v49 }
 0x459   : > { %v2425_v17 = vpop.eup %2424 }
 0x45a   : > { %1416 = vadd.xlane.f32.xlu1 %v2415_v10  ;;  %1414 = vadd.xlane.f32.xlu0 %v2417_v60  ;;  %v1581_v21 = vpack.c.bf16 %v2423_v11, %v2425_v17  ;;  %v2427_v31 = vpop.eup %2426  ;;  %v3196_v2 = vpop.permute.xlu1 %1501 }
 0x45b   : > { %v3198_v26 = vpop.permute.xlu0 %1516 }
 0x45c   : > { %2279 = vmatprep.mubr.bf16.mxu1 %v1581_v21 }
 0x45d   : > { %v2429_v12 = vpop.eup %2428 }
 0x45e   : > { %1428 = vadd.xlane.f32.xlu1 %v2427_v31  ;;  %1426 = vadd.xlane.f32.xlu0 %v2429_v12  ;;  %v1582_v57 = vpack.c.bf16 %v2427_v31, %v2429_v12  ;;  %v3180_v63 = vpop.eup %2430  ;;  %v3200_v52 = vpop.permute.xlu1 %1511 }
 0x45f   : > { %v3183_v13 = vpop.eup %2432  ;;  %v3202_v30 = vpop.permute.xlu0 %1536 }
 0x460   : > { %2280 = vmatmul.mubr.bf16.gmra.mrb[28].mxu1 %v1582_v57 }
 0x462   : > { %1424 = vadd.xlane.f32.xlu1 %v2423_v11  ;;  %1422 = vadd.xlane.f32.xlu0 %v2425_v17  ;;  %v3204_v55 = vpop.permute.xlu1 %1531  ;;  %v1376_v11 = vld [vmem:[#allocation4 + $0x50] sm:$0xff]  ;;  %v1377_v17 = vld [vmem:[#allocation4 + $0x58] sm:$0xff] }
 0x463   : > { %v3206_v15 = vpop.permute.xlu0 %1526  ;;  %v1392_v35 = vmul.f32 %v3146_v1, %v1376_v11  ;;  %v1393_v31 = vmul.f32 %v3136_v47, %v1377_v17  ;;  %v1381_v1 = vld [vmem:[#allocation4 + $0x78] sm:$0xff] }
 0x464   : > { %v1397_v19 = vmul.f32 %v3183_v13, %v1381_v1  ;;  %v1470_v11 = vld [vmem:[#allocation5 + $0x38] sm:$0xff] }
 0x465   : > { %v1566_v44 = vmul.f32 %v3198_v26, %v1470_v11 }
 0x466   : > { %v3208_v32 = vpop.permute.xlu1 %1521 }
 0x467   : > { %v3210_v33 = vpop.permute.xlu0 %1546 }
 0x46a   : > { %v3212_v20 = vpop.permute.xlu1 %1541 }
 0x473   : > { %1551 = vperm.xlu1 %2369, %v3180_v63  }
 0x478   : > { %1556 = vperm.xlu0 %2368, %v3183_v13   ;;  %v1465_v13 = vld [vmem:[#allocation5 + $0x10] sm:$0xff] }
 0x4c2   : > { %v1403_v58 = vpop.xlane.xlu0 %1402 }
 0x4c3   : > { %v1432_v28 = vadd.f32 %v1403_v58, %v1384_v14  ;;  %v1399_v34 = vpop.xlane.xlu1 %1398 }
 0x4c4   : > { %v1430_v42 = vadd.f32 %v1399_v34, %v1382_v40  ;;  %v1380_v40 = vld [vmem:[#allocation4 + $0x70] sm:$0xff] }
 0x4c5   : > { %1449 = vst.msk [vmem:[#allocation4 + $0x10] sm:$0xff] %vm1446_vm3, %v1432_v28  ;;  %v1396_v34 = vmul.f32 %v3180_v63, %v1380_v40 }
 0x4c6   : > { %1447 = vst.msk [vmem:[#allocation4] sm:$0xff] %vm1446_vm3, %v1430_v42 }
 0x4c7   : > { %v1405_v45 = vpop.xlane.xlu1 %1404 }
 0x4c8   : > { %v1433_v8 = vadd.f32 %v1405_v45, %v1385_v43 }
 0x4ca   : > { %1450 = vst.msk [vmem:[#allocation4 + $0x18] sm:$0xff] %vm1446_vm3, %v1433_v8  ;;  %v1401_v59 = vpop.xlane.xlu0 %1400  ;;  %v1394_v8 = vmul.f32 %v3155_v29, %v1378_v18 }
 0x4cb   : > { %v1431_v24 = vadd.f32 %v1401_v59, %v1383_v41  ;;  %v1395_v41 = vmul.f32 %v3148_v4, %v1379_v6 }
 0x4cd   : > { %1448 = vst.msk [vmem:[#allocation4 + $0x8] sm:$0xff] %vm1446_vm3, %v1431_v24 }
 0x4cf   : > { %v1411_v9 = vpop.xlane.xlu0 %1410 }
 0x4d0   : > { %v1436_v7 = vadd.f32 %v1411_v9, %v1388_v62  ;;  %v1463_v62 = vld [vmem:[#allocation5] sm:$0xff]  ;;  %v1466_v9 = vld [vmem:[#allocation5 + $0x18] sm:$0xff] }
 0x4d1   : > { %v1562_v29 = vmul.f32 %v3190_v27, %v1466_v9 }
 0x4d2   : > { %1453 = vst.msk [vmem:[#allocation4 + $0x30] sm:$0xff] %vm1446_vm3, %v1436_v7  ;;  %v1561_v7 = vmul.f32 %v3192_v37, %v1465_v13  ;;  %v1467_v37 = vld [vmem:[#allocation5 + $0x20] sm:$0xff] }
 0x4d3   : > { %v1407_v10 = vpop.xlane.xlu0 %1406  ;;  %v1563_v27 = vmul.f32 %v3196_v2, %v1467_v37  ;;  %v1472_v2 = vld [vmem:[#allocation5 + $0x48] sm:$0xff] }
 0x4d4   : > { %v1434_v60 = vadd.f32 %v1407_v10, %v1386_v46  ;;  %v1559_v46 = vmul.f32 %v3186_v0, %v1463_v62  ;;  %v1468_v0 = vld [vmem:[#allocation5 + $0x28] sm:$0xff] }
 0x4d6   : > { %1451 = vst.msk [vmem:[#allocation4 + $0x20] sm:$0xff] %vm1446_vm3, %v1434_v60 }
 0x4db   : > { %v1413_v5 = vpop.xlane.xlu1 %1412 }
 0x4dc   : > { %v1437_v39 = vadd.f32 %v1413_v5, %v1389_v23 }
 0x4de   : > { %1454 = vst.msk [vmem:[#allocation4 + $0x38] sm:$0xff] %vm1446_vm3, %v1437_v39 }
 0x4df   : > { %v1409_v49 = vpop.xlane.xlu1 %1408 }
 0x4e0   : > { %v1435_v21 = vadd.f32 %v1409_v49, %v1387_v51  ;;  %v1469_v49 = vld [vmem:[#allocation5 + $0x30] sm:$0xff] }
 0x4e1   : > { %v1565_v17 = vmul.f32 %v3200_v52, %v1469_v49  ;;  %v1474_v52 = vld [vmem:[#allocation5 + $0x58] sm:$0xff] }
 0x4e2   : > { %1452 = vst.msk [vmem:[#allocation4 + $0x28] sm:$0xff] %vm1446_vm3, %v1435_v21 }
 0x4e3   : > { %v1419_v12 = vpop.xlane.xlu0 %1418  ;;  %v1421_v57 = vpop.xlane.xlu1 %1420 }
 0x4e4   : > { %v1440_v54 = vadd.f32 %v1419_v12, %v1392_v35  ;;  %v1441_v36 = vadd.f32 %v1421_v57, %v1393_v31  ;;  %v1564_v12 = vmul.f32 %v3194_v53, %v1468_v0  ;;  %v1570_v53 = vmul.f32 %v3202_v30, %v1474_v52 }
 0x4e6   : > { %1457 = vst.msk [vmem:[#allocation4 + $0x50] sm:$0xff] %vm1446_vm3, %v1440_v54  ;;  %1458 = vst.msk [vmem:[#allocation4 + $0x58] sm:$0xff] %vm1446_vm3, %v1441_v36  ;;  %v1473_v36 = vld [vmem:[#allocation5 + $0x50] sm:$0xff] }
 0x4e7   : > { %v1415_v14 = vpop.xlane.xlu0 %1414  ;;  %v1417_v58 = vpop.xlane.xlu1 %1416 }
 0x4e8   : > { %v1438_v28 = vadd.f32 %v1415_v14, %v1390_v56  ;;  %v1439_v47 = vadd.f32 %v1417_v58, %v1391_v38  ;;  %v1471_v38 = vld [vmem:[#allocation5 + $0x40] sm:$0xff]  ;;  %v1569_v14 = vmul.f32 %v3204_v55, %v1473_v36  ;;  %v1478_v55 = vld [vmem:[#allocation5 + $0x78] sm:$0xff] }
 0x4e9   : > { %v1567_v26 = vmul.f32 %v3208_v32, %v1471_v38 }
 0x4ea   : > { %1455 = vst.msk [vmem:[#allocation4 + $0x40] sm:$0xff] %vm1446_vm3, %v1438_v28  ;;  %1456 = vst.msk [vmem:[#allocation4 + $0x48] sm:$0xff] %vm1446_vm3, %v1439_v47  ;;  %v1568_v28 = vmul.f32 %v3206_v15, %v1472_v2 }
 0x4eb   : > { %v1427_v42 = vpop.xlane.xlu0 %1426  ;;  %v1429_v43 = vpop.xlane.xlu1 %1428 }
 0x4ec   : > { %v1444_v45 = vadd.f32 %v1427_v42, %v1396_v34  ;;  %v1445_v3 = vadd.f32 %v1429_v43, %v1397_v19  ;;  %v1477_v43 = vld [vmem:[#allocation5 + $0x70] sm:$0xff] }
 0x4ed   : > { %v1743_v37 = vld [vmem:[#allocation4 + $0x58] sm:$0xff] (!%p2071_p1)  ;;  %v1742_v0 = vld [vmem:[#allocation4 + $0x50] sm:$0xff] (!%p2071_p1) }
 0x4ee   : > { %1461 = vst.msk [vmem:[#allocation4 + $0x70] sm:$0xff] %vm1446_vm3, %v1444_v45  ;;  %1462 = vst.msk [vmem:[#allocation4 + $0x78] sm:$0xff] %vm1446_vm3, %v1445_v3  ;;  %v1475_v45 = vld [vmem:[#allocation5 + $0x60] sm:$0xff]  ;;  %v1476_v3 = vld [vmem:[#allocation5 + $0x68] sm:$0xff] }
 0x4ef   : > { %v1423_v59 = vpop.xlane.xlu0 %1422  ;;  %v1425_v24 = vpop.xlane.xlu1 %1424 }
 0x4f0   : > { %v1442_v48 = vadd.f32 %v1423_v59, %v1394_v8  ;;  %v1443_v63 = vadd.f32 %v1425_v24, %v1395_v41  ;;  %v1571_v8 = vmul.f32 %v3212_v20, %v1475_v45  ;;  %v1732_v20 = vld [vmem:[#allocation4] sm:$0xff] (!%p2071_p1) }
 0x4f2   : > { %1459 = vst.msk [vmem:[#allocation4 + $0x60] sm:$0xff] %vm1446_vm3, %v1442_v48  ;;  %1460 = vst.msk [vmem:[#allocation4 + $0x68] sm:$0xff] %vm1446_vm3, %v1443_v63  ;;  %v1572_v48 = vmul.f32 %v3210_v33, %v1476_v3  ;;  %v1733_v33 = vld [vmem:[#allocation4 + $0x8] sm:$0xff] (!%p2071_p1) }
 0x4f3   : > { %v1552_v18 = vpop.permute.xlu1 %1551 }
 0x4f4   : > { %v1573_v30 = vmul.f32 %v1552_v18, %v1477_v43 }
 0x4f7   : > { %v1557_v32 = vpop.permute.xlu0 %1556 }
 0x4f8   : > { %v1574_v15 = vmul.f32 %v1557_v32, %v1478_v55 }
 0x513   : > { %v2269_v10 = vpop.f32.mrb[16].mxu1 }
 0x514   : > { %v1682_v4 = vadd.f32 %v2269_v10, %v1561_v7  ;;  %v1617_v60 = vpop.f32.mrb[17].mxu1  ;;  %v1734_v7 = vld [vmem:[#allocation4 + $0x10] sm:$0xff] (!%p2071_p1)  ;;  %v2567_v10 = vmov (!%p2071_p1), 0  }
 0x515   : > { %v1680_v23 = vadd.f32 %v1617_v60, %v1559_v46  ;;  %v2270_v5 = vpop.f32.mrb[18].mxu1  ;;  %v1735_v46 = vld [vmem:[#allocation4 + $0x18] sm:$0xff] (!%p2071_p1)  ;;  %2435 = vset.pattern.permute.xlu1 (!%p2071_p1), %v2567_v10  ;;  %2434 = vset.pattern.permute.xlu0 (!%p2071_p1), %v2567_v10  ;;  %2436 = vrcp.f32 (!%p2071_p1), %v1734_v7 }
 0x516   : > { %1698 = vst [vmem:[#allocation5 + $0x10] sm:$0xff] %v1682_v4  ;;  %v1683_v22 = vadd.f32 %v2270_v5, %v1562_v29  ;;  %v1620_v39 = vpop.f32.mrb[19].mxu1  ;;  %2438 = vrcp.f32 (!%p2071_p1), %v1732_v20  ;;  %v1737_v29 = vld [vmem:[#allocation4 + $0x28] sm:$0xff] (!%p2071_p1)  ;;  %v1736_v4 = vld [vmem:[#allocation4 + $0x20] sm:$0xff] (!%p2071_p1)  ;;  %v1739_v60 = vld [vmem:[#allocation4 + $0x38] sm:$0xff] (!%p2071_p1) }
 0x517   : > { %1696 = vst [vmem:[#allocation5] sm:$0xff] %v1680_v23  ;;  %v1681_v51 = vadd.f32 %v1620_v39, %v1560_v50  ;;  %2440 = vrcp.f32 (!%p2071_p1), %v1735_v46  ;;  %v1738_v50 = vld [vmem:[#allocation4 + $0x30] sm:$0xff] (!%p2071_p1) }
 0x518   : > { %1699 = vst [vmem:[#allocation5 + $0x18] sm:$0xff] %v1683_v22  ;;  %2442 = vrcp.f32 (!%p2071_p1), %v1733_v33  ;;  %v1741_v22 = vld [vmem:[#allocation4 + $0x48] sm:$0xff] (!%p2071_p1) }
 0x519   : > { %1697 = vst [vmem:[#allocation5 + $0x8] sm:$0xff] %v1681_v51  ;;  %2444 = vrcp.f32 (!%p2071_p1), %v1737_v29  ;;  %v1740_v51 = vld [vmem:[#allocation4 + $0x40] sm:$0xff] (!%p2071_p1) }
 0x51a   : > { %2446 = vrcp.f32 (!%p2071_p1), %v1736_v4 }
 0x51b   : > { %2448 = vrcp.f32 (!%p2071_p1), %v1739_v60 }
 0x51c   : > { %2450 = vrcp.f32 (!%p2071_p1), %v1738_v50 }
 0x51d   : > { %2452 = vrcp.f32 (!%p2071_p1), %v1741_v22  ;;  %v1766_v2 = vld [vmem:[#allocation5 + $0x10] sm:$0xff] (!%p2071_p1) }
 0x51e   : > { %2454 = vrcp.f32 (!%p2071_p1), %v1740_v51 }
 0x51f   : > { %v2437_v23 = vpop.eup (!%p2071_p1), %2436  ;;  %2456 = vrcp.f32 (!%p2071_p1), %v1743_v37 }
 0x520   : > { %v2439_v5 = vpop.eup (!%p2071_p1), %2438  ;;  %1792 = vperm.xlu1 (!%p2071_p1), %2435, %v2437_v23   ;;  %2458 = vrcp.f32 (!%p2071_p1), %v1742_v0 }
 0x521   : > { %v2441_v39 = vpop.eup (!%p2071_p1), %2440  ;;  %1782 = vperm.xlu0 (!%p2071_p1), %2434, %v2439_v5  }
 0x522   : > { %v2443_v49 = vpop.eup (!%p2071_p1), %2442 }
 0x523   : > { %v2273_v21 = vpop.f32.mrb[20].mxu1  ;;  %v2445_v11 = vpop.eup (!%p2071_p1), %2444 }
 0x524   : > { %v1686_v35 = vadd.f32 %v2273_v21, %v1565_v17  ;;  %v1633_v31 = vpop.f32.mrb[21].mxu1  ;;  %1797 = vperm.xlu1 (!%p2071_p1), %2435, %v2441_v39   ;;  %v2447_v17 = vpop.eup (!%p2071_p1), %2446 }
 0x525   : > { %v1684_v57 = vadd.f32 %v1633_v31, %v1563_v27  ;;  %v2274_v61 = vpop.f32.mrb[22].mxu1  ;;  %1787 = vperm.xlu0 (!%p2071_p1), %2434, %v2443_v49   ;;  %v1745_v27 = vld [vmem:[#allocation4 + $0x68] sm:$0xff] (!%p2071_p1)  ;;  %v2449_v21 = vpop.eup (!%p2071_p1), %2448  ;;  %v1747_v31 = vld [vmem:[#allocation4 + $0x78] sm:$0xff] (!%p2071_p1) }
 0x526   : > { %1702 = vst [vmem:[#allocation5 + $0x30] sm:$0xff] %v1686_v35  ;;  %v1687_v25 = vadd.f32 %v2274_v61, %v1566_v44  ;;  %v1636_v54 = vpop.f32.mrb[23].mxu1  ;;  %v1744_v44 = vld [vmem:[#allocation4 + $0x60] sm:$0xff] (!%p2071_p1)  ;;  %v2451_v35 = vpop.eup (!%p2071_p1), %2450  ;;  %2460 = vrcp.f32 (!%p2071_p1), %v1745_v27 }
 0x527   : > { %1700 = vst [vmem:[#allocation5 + $0x20] sm:$0xff] %v1684_v57  ;;  %v1685_v56 = vadd.f32 %v1636_v54, %v1564_v12  ;;  %2462 = vrcp.f32 (!%p2071_p1), %v1744_v44  ;;  %v2453_v12 = vpop.eup (!%p2071_p1), %2452  ;;  %v1746_v57 = vld [vmem:[#allocation4 + $0x70] sm:$0xff] (!%p2071_p1) }
 0x528   : > { %1703 = vst [vmem:[#allocation5 + $0x38] sm:$0xff] %v1687_v25  ;;  %1807 = vperm.xlu1 (!%p2071_p1), %2435, %v2445_v11   ;;  %v2455_v61 = vpop.eup (!%p2071_p1), %2454  ;;  %2464 = vrcp.f32 (!%p2071_p1), %v1747_v31 }
 0x529   : > { %1701 = vst [vmem:[#allocation5 + $0x28] sm:$0xff] %v1685_v56  ;;  %1802 = vperm.xlu0 (!%p2071_p1), %2434, %v2447_v17   ;;  %2466 = vrcp.f32 (!%p2071_p1), %v1746_v57  ;;  %v2457_v25 = vpop.eup (!%p2071_p1), %2456 }
 0x52a   : > { %v2459_v54 = vpop.eup (!%p2071_p1), %2458 }
 0x52b   : > { %v2277_v58 = vpop.f32.mrb[24].mxu1 }
 0x52c   : > { %v1690_v40 = vadd.f32 %v2277_v58, %v1569_v14  ;;  %v1649_v1 = vpop.f32.mrb[25].mxu1  ;;  %1817 = vperm.xlu1 (!%p2071_p1), %2435, %v2449_v21   ;;  %v1764_v14 = vld [vmem:[#allocation5] sm:$0xff] (!%p2071_p1) }
 0x52d   : > { %v1688_v47 = vadd.f32 %v1649_v1, %v1567_v26  ;;  %v2278_v34 = vpop.f32.mrb[26].mxu1  ;;  %1812 = vperm.xlu0 (!%p2071_p1), %2434, %v2451_v35   ;;  %v1767_v1 = vld [vmem:[#allocation5 + $0x18] sm:$0xff] (!%p2071_p1) }
 0x52e   : > { %1706 = vst [vmem:[#allocation5 + $0x50] sm:$0xff] %v1690_v40  ;;  %v1691_v19 = vadd.f32 %v2278_v34, %v1570_v53  ;;  %v1652_v42 = vpop.f32.mrb[27].mxu1  ;;  %v1768_v18 = vld [vmem:[#allocation5 + $0x20] sm:$0xff] (!%p2071_p1) }
 0x52f   : > { %1704 = vst [vmem:[#allocation5 + $0x40] sm:$0xff] %v1688_v47  ;;  %v1689_v6 = vadd.f32 %v1652_v42, %v1568_v28  ;;  %v1765_v28 = vld [vmem:[#allocation5 + $0x8] sm:$0xff] (!%p2071_p1)  ;;  %v1771_v3 = vld [vmem:[#allocation5 + $0x38] sm:$0xff] (!%p2071_p1) }
 0x530   : > { %1707 = vst [vmem:[#allocation5 + $0x58] sm:$0xff] %v1691_v19  ;;  %1827 = vperm.xlu1 (!%p2071_p1), %2435, %v2453_v12   ;;  %v2461_v36 = vpop.eup (!%p2071_p1), %2460  ;;  %v1769_v43 = vld [vmem:[#allocation5 + $0x28] sm:$0xff] (!%p2071_p1) }
 0x531   : > { %1705 = vst [vmem:[#allocation5 + $0x48] sm:$0xff] %v1689_v6  ;;  %1822 = vperm.xlu0 (!%p2071_p1), %2434, %v2455_v61   ;;  %v2463_v56 = vpop.eup (!%p2071_p1), %2462 }
 0x532   : > { %v2465_v38 = vpop.eup (!%p2071_p1), %2464 }
 0x533   : > { %v2281_v41 = vpop.f32.mrb[28].mxu1  ;;  %1731 = sbr.rel (%p2071_p1) target bundleno = 1472 (0x5c0), region = 64  ;;  %v2467_v52 = vpop.eup (!%p2071_p1), %2466 }
 0x534   : > { %v1694_v59 = vadd.f32 %v2281_v41, %v1573_v30  ;;  %v1665_v24 = vpop.f32.mrb[29].mxu1  ;;  %1837 = vperm.xlu1 (!%p2071_p1), %2435, %v2457_v25   ;;  %v1770_v30 = vld [vmem:[#allocation5 + $0x30] sm:$0xff] (!%p2071_p1) }
 0x535   : > { %v1692_v63 = vadd.f32 %v1665_v24, %v1571_v8  ;;  %v2282_v13 = vpop.f32.mrb[30].mxu1  ;;  %1832 = vperm.xlu0 (!%p2071_p1), %2434, %v2459_v54   ;;  %v1774_v7 = vld [vmem:[#allocation5 + $0x50] sm:$0xff] (!%p2071_p1) }
 0x536   : > { %1710 = vst [vmem:[#allocation5 + $0x70] sm:$0xff] %v1694_v59  ;;  %v1695_v62 = vadd.f32 %v2282_v13, %v1574_v15  ;;  %v1668_v9 = vpop.f32.mrb[31].mxu1 }
 0x537   : > { %1708 = vst [vmem:[#allocation5 + $0x60] sm:$0xff] %v1692_v63  ;;  %v1693_v16 = vadd.f32 %v1668_v9, %v1572_v48  ;;  %v1772_v48 = vld [vmem:[#allocation5 + $0x40] sm:$0xff] (!%p2071_p1) }
 0x538   : > { %1711 = vst [vmem:[#allocation5 + $0x78] sm:$0xff] %v1695_v62  ;;  %1847 = vperm.xlu1 (!%p2071_p1), %2435, %v2461_v36   ;;  %v1773_v24 = vld [vmem:[#allocation5 + $0x48] sm:$0xff] (!%p2071_p1) }
 0x539   : > { %1709 = vst [vmem:[#allocation5 + $0x68] sm:$0xff] %v1693_v16  ;;  %1842 = vperm.xlu0 (!%p2071_p1), %2434, %v2463_v56   ;;  %v1775_v16 = vld [vmem:[#allocation5 + $0x58] sm:$0xff] (!%p2071_p1) }
 0x53c   : > { %1857 = vperm.xlu1 %2435, %v2465_v38  }
 0x53d   : > { %1852 = vperm.xlu0 %2434, %v2467_v52   ;;  %v1778_v39 = vld [vmem:[#allocation5 + $0x70] sm:$0xff] }
 0x53e   : > { %v1776_v4 = vld [vmem:[#allocation5 + $0x60] sm:$0xff] }
 0x53f   : > { %v1779_v22 = vld [vmem:[#allocation5 + $0x78] sm:$0xff] }
 0x540   : > { %v1777_v29 = vld [vmem:[#allocation5 + $0x68] sm:$0xff] }
 0x59f   : > { %v1793_v26 = vpop.permute.xlu1 %1792 }
 0x5a0   : > { %v1862_v58 = vmul.f32 %v1793_v26, %v1766_v2  ;;  %v1783_v53 = vpop.permute.xlu0 %1782 }
 0x5a1   : > { %v1860_v40 = vmul.f32 %v1783_v53, %v1764_v14 }
 0x5a2   : > { %1878 = vst [vmem:[%s2711_s16 + $0x10] sm:$0xff] %v1862_v58 }
 0x5a3   : > { %1876 = vst [vmem:[%s2711_s16] sm:$0xff] %v1860_v40  ;;  %v1798_v47 = vpop.permute.xlu1 %1797 }
 0x5a4   : > { %v1863_v34 = vmul.f32 %v1798_v47, %v1767_v1  ;;  %v1788_v19 = vpop.permute.xlu0 %1787 }
 0x5a5   : > { %v1861_v42 = vmul.f32 %v1788_v19, %v1765_v28 }
 0x5a6   : > { %1879 = vst [vmem:[%s2711_s16 + $0x18] sm:$0xff] %v1863_v34 }
 0x5a7   : > { %1877 = vst [vmem:[%s2711_s16 + $0x8] sm:$0xff] %v1861_v42  ;;  %v1808_v6 = vpop.permute.xlu1 %1807 }
 0x5a8   : > { %v1865_v45 = vmul.f32 %v1808_v6, %v1769_v43  ;;  %v1803_v55 = vpop.permute.xlu0 %1802 }
 0x5a9   : > { %v1864_v32 = vmul.f32 %v1803_v55, %v1768_v18 }
 0x5aa   : > { %1881 = vst [vmem:[%s2711_s16 + $0x28] sm:$0xff] %v1865_v45 }
 0x5ab   : > { %1880 = vst [vmem:[%s2711_s16 + $0x20] sm:$0xff] %v1864_v32  ;;  %v1818_v8 = vpop.permute.xlu1 %1817 }
 0x5ac   : > { %v1867_v41 = vmul.f32 %v1818_v8, %v1771_v3  ;;  %v1813_v15 = vpop.permute.xlu0 %1812 }
 0x5ad   : > { %v1866_v59 = vmul.f32 %v1813_v15, %v1770_v30 }
 0x5ae   : > { %1883 = vst [vmem:[%s2711_s16 + $0x38] sm:$0xff] %v1867_v41 }
 0x5af   : > { %1882 = vst [vmem:[%s2711_s16 + $0x30] sm:$0xff] %v1866_v59  ;;  %v1828_v63 = vpop.permute.xlu1 %1827 }
 0x5b0   : > { %v1869_v13 = vmul.f32 %v1828_v63, %v1773_v24  ;;  %v1823_v62 = vpop.permute.xlu0 %1822 }
 0x5b1   : > { %v1868_v9 = vmul.f32 %v1823_v62, %v1772_v48 }
 0x5b2   : > { %1885 = vst [vmem:[%s2711_s16 + $0x48] sm:$0xff] %v1869_v13 }
 0x5b3   : > { %1884 = vst [vmem:[%s2711_s16 + $0x40] sm:$0xff] %v1868_v9  ;;  %v1838_v20 = vpop.permute.xlu1 %1837 }
 0x5b4   : > { %v1871_v46 = vmul.f32 %v1838_v20, %v1775_v16  ;;  %v1833_v10 = vpop.permute.xlu0 %1832 }
 0x5b5   : > { %v1870_v33 = vmul.f32 %v1833_v10, %v1774_v7 }
 0x5b6   : > { %1887 = vst [vmem:[%s2711_s16 + $0x58] sm:$0xff] %v1871_v46 }
 0x5b7   : > { %1886 = vst [vmem:[%s2711_s16 + $0x50] sm:$0xff] %v1870_v33  ;;  %v1848_v60 = vpop.permute.xlu1 %1847 }
 0x5b8   : > { %v1873_v50 = vmul.f32 %v1848_v60, %v1777_v29  ;;  %v1843_v23 = vpop.permute.xlu0 %1842 }
 0x5b9   : > { %v1872_v5 = vmul.f32 %v1843_v23, %v1776_v4 }
 0x5ba   : > { %1889 = vst [vmem:[%s2711_s16 + $0x68] sm:$0xff] %v1873_v50 }
 0x5bb   : > { %1888 = vst [vmem:[%s2711_s16 + $0x60] sm:$0xff] %v1872_v5  ;;  %v1858_v51 = vpop.permute.xlu1 %1857 }
 0x5bc   : > { %v1875_v49 = vmul.f32 %v1858_v51, %v1779_v22  ;;  %v1853_v37 = vpop.permute.xlu0 %1852 }
 0x5bd   : > { %v1874_v11 = vmul.f32 %v1853_v37, %v1778_v39 }
 0x5be   : > { %1891 = vst [vmem:[%s2711_s16 + $0x78] sm:$0xff] %v1875_v49 }
 0x5bf   : > { %1890 = vst [vmem:[%s2711_s16 + $0x70] sm:$0xff] %v1874_v11 }
 0x5c0 PF: > { %s2078_s12 = sshll.u32 %s2550_s13, 11  ;;  %s1908_s23 = sshll.u32 %s2711_s16, 4  ;;  %s3284_s23 = int_to_ptr.vmem [resolvable:$true] %s1908_s23 }
 0x5c1   : > { %s3281_s18 = scalar_lea.hbm %s3349_s9, %s2078_s12  ;;  %s3370_s20 = sand.u32 1, %s2538_s10  }
 0x5c2   : > { %s3288_s29 = scalar_lea.sflag [#allocation7], %s3370_s20  ;;  %s2468_s14 = scalar_lea.vmem %s3284_s23, 2048 }
 0x5c3   : > { %p2469_p2 = scmp.ne.s32.totalorder %s3284_s23, %s2468_s14  ;;  %s2568_s13 = smov [#allocation6]  }
 0x5c4   : > { %s2472_s24 = sshll.u32 %s2568_s13, 4  ;;  %s2473_s24 = int_to_ptr.vmem [resolvable:$false] %s2472_s24 }
 0x5c5   : > { %p2470_p4 = pnand %p2469_p2, %p2670_p3  ;;  %s2474_s19 = scalar_lea.vmem %s2473_s24, 4096 }
 0x5c6   : > { %p2475_p6 = scmp.lt.s32.totalorder %s3284_s23, %s2473_s24  ;;  %p2476_p7 = scmp.lt.s32.totalorder %s2474_s19, %s2468_s14 }
 0x5c7   : > { %p2471_p5 = pneg %p2470_p4 }
 0x5c8   : > { %p2477_p8 = por %p2476_p7, %p2475_p6 }
 0x5ca   : > { %p2478_p10 = pnand %p2477_p8, %p2471_p5 }
 0x5cc   : > { %2481 = shalt.err (!%p2478_p10)
}
 0x5cd   : > { %s2482_s16 = scalar_lea.hbm %s3281_s18, 2048  ;;  %s2486_s25 = scalar_lea.hbm %s3349_s9, 4096 }
 0x5ce   : > { %p2483_p11 = scmp.ne.s32.totalorder %s3281_s18, %s2482_s16  ;;  %p2487_p0 = scmp.lt.u32.totalorder %s3281_s18, %s3349_s9 }
 0x5cf   : > { %p2488_p1 = scmp.lt.u32.totalorder %s2486_s25, %s2482_s16  ;;  %p2490_p4 = scmp.lt.u32.totalorder %s2482_s16, %s3281_s18 }
 0x5d0   : > { %p2484_p12 = pnand %p2483_p11, %p2670_p3 }
 0x5d1   : > { %p2489_p2 = por %p2488_p1, %p2487_p0 }
 0x5d2   : > { %p2485_p13 = pneg %p2484_p12 }
 0x5d3   : > { %p2491_p5 = por %p2490_p4, %p2489_p2 }
 0x5d5   : > { %p2492_p6 = pnand %p2491_p5, %p2485_p13 }
 0x5d7   : > { %2495 = shalt.err (!%p2492_p6)
}
 0x5d8   : > { %s2569_s30 = smov 128   ;;  %s2570_s27 = smov 8  }
 0x5d9   : > { %2291 = dma.vmem_to_hbm [thread:$0]  (%p2670_p3), %s3284_s23, 2048, %s3281_s18, %s3288_s29, %s2569_s30, %s2569_s30, %s2570_s27  }
 0x5da PF: > { %s3371_s12 = sld [smem:[#allocation13_spill]]  ;;  %s3372_s28 = sld [smem:[#allocation9_spill]] }
 0x5e0   : > { %p2297_p7 = scmp.ge.s32.totalorder %s3371_s12, 2  ;;  %s1923_s20 = sand.u32 1, %s3372_s28  }
 0x5e1   : > { %s1924_s14 = scalar_lea.sflag [#allocation7], %s1923_s20 }
 0x5e2   : > { %p2294_p8 = pnand %p2297_p7, %p2680_p9 }
 0x5e4   : > { %2529 = dma.done.wait (!%p2294_p8), %s1924_s14, 2048  }
 0x5e5   : > { %2531 = vsyncadd (!%p2294_p8), %s1924_s14, 4294965248  ;;  %s22_s16 = sadd.s32 1, %s3371_s12   ;;  %s3374_s13 = sld [smem:[#allocation10_spill]] }
 0x5e6   : > { %p19_p10 = scmp.ge.s32.totalorder %s22_s16, 6   ;;  %s3375_s11 = sld [smem:[#allocation17_spill]] }
 0x5e7   : > { %s3376_s12 = sld [smem:[#allocation11_spill]]  ;;  %s3377_s21 = sld [smem:[#allocation12_spill]] }
 0x5e8   : > { %s3378_s14 = sld [smem:[#allocation14_spill]]  ;;  %s3379_s15 = sld [smem:[#allocation15_spill]] }
 0x5e9   : > { %s3380_s30 = smov %s2538_s10  ;;  %21 = sbr.rel (!%p19_p10) target bundleno = 5 (0x5), region = 105 }
 0x5eb   : > { %s3381_s10 = smov %s3374_s13 }
 0x5ed   : > { %s3382_s13 = smov %s3377_s21 }
 0x5f0   :  { %1929 = vsyncpa [#allocation7], 1 }
 0x5f1   :  { %1931 = vsyncpa [#allocation7 + $0x1], 1 }

</bundles_post_ra>
